<compile_context>
chip_gen: v7x
topology: tpu7x:2x2x1
jax: 0.10.0
libtpu: 0.0.40
codegen_flags: <defaults>
</compile_context>

<pallas_src>
import jax
import jax.numpy as jnp
from jax.experimental import pallas as pl
from jax.experimental.pallas import tpu as pltpu

CIN, COUT, KH, KW = 3, 3, 3, 3  # nn.Conv2d(3, 3, 3, 1, 0)


def conv2d_kernel(x_ref, w_ref, b_ref, o_ref):
    """Valid 3x3 conv for a B_TILE-sized slab of batch items.

    x_ref: VMEM (B_TILE, CIN, H, W)
    w_ref: SMEM (COUT*CIN*KH*KW,)   flattened OIHW weights (scalar reads)
    b_ref: SMEM (COUT,)             bias
    o_ref: VMEM (B_TILE, COUT, HO, WO)
    """
    b_tile, _, H, W = x_ref.shape
    HO, WO = o_ref.shape[2], o_ref.shape[3]

    for b in range(b_tile):                      # static unroll (small tile)
        acc = [None] * COUT                      # one accumulator per out channel
        for ci in range(CIN):
            # Single VMEM load per input-channel plane (3 loads / batch item).
            plane = x_ref[b, ci, :, :]           # (H, W) f32
            for kh in range(KH):
                # kh shift via sublane roll; wrapped rows land at indices >= HO.
                rows = plane if kh == 0 else pltpu.roll(plane, shift=H - kh, axis=0)
                for kw in range(KW):
                    # kw shift via lane roll; wrapped cols land at indices >= WO.
                    shifted = rows if kw == 0 else pltpu.roll(rows, shift=W - kw, axis=1)
                    # Share this shifted patch across all 3 output channels.
                    for co in range(COUT):
                        w_s = w_ref[((co * CIN + ci) * KH + kh) * KW + kw]
                        if acc[co] is None:
                            # Fold bias into the first tap (no zero plane + extra add).
                            acc[co] = shifted * w_s + b_ref[co]
                        else:
                            acc[co] = acc[co] + shifted * w_s
        for co in range(COUT):
            o_ref[b, co, :, :] = acc[co][:HO, :WO]


def conv2d_pallas(x, weight, bias):
    """x: (N, CIN, H, W) f32; weight: (COUT, CIN, KH, KW) f32; bias: (COUT,) f32."""
    N, cin, H, W = x.shape
    assert cin == CIN
    HO, WO = H - KH + 1, W - KW + 1

    # Pack multiple batch items per grid step to amortize per-step overhead, but
    # keep at least 2 grid steps when N >= 2 so both v7x TensorCores are used.
    if N >= 2:
        b_tile = max(1, N // 2)
        while N % b_tile != 0:
            b_tile -= 1
    else:
        b_tile = 1
    grid = (N // b_tile,)

    w_flat = weight.reshape(-1).astype(jnp.float32)   # glue: param reshape only
    b_flat = bias.astype(jnp.float32)

    return pl.pallas_call(
        conv2d_kernel,
        out_shape=jax.ShapeDtypeStruct((N, COUT, HO, WO), jnp.float32),
        grid_spec=pltpu.PrefetchScalarGridSpec(
            num_scalar_prefetch=0,
            grid=grid,
            in_specs=[
                pl.BlockSpec((b_tile, CIN, H, W), lambda n: (n, 0, 0, 0)),
                pl.BlockSpec(memory_space=pltpu.MemorySpace.SMEM),
                pl.BlockSpec(memory_space=pltpu.MemorySpace.SMEM),
            ],
            out_specs=pl.BlockSpec((b_tile, COUT, HO, WO), lambda n: (n, 0, 0, 0)),
        ),
        compiler_params=pltpu.CompilerParams(
            dimension_semantics=("parallel",),
            # v5e default scoped VMEM is 16 MiB; 32 MiB matches v6e/v7x defaults
            # and gives headroom for larger per-step blocks without OOM.
            vmem_limit_bytes=32 * 1024 * 1024,
        ),
    )(x, w_flat, b_flat)


def conv2d_reference(x, weight, bias):
    # Pure-JAX reference (valid conv, NCHW / OIHW) for correctness checking.
    out = jax.lax.conv_general_dilated(
        x, weight, window_strides=(1, 1), padding="VALID",
        dimension_numbers=("NCHW", "OIHW", "NCHW"))
    return out + bias.reshape(1, COUT, 1, 1)


if __name__ == "__main__":
    key = jax.random.PRNGKey(0)
    k_x, k_w, k_b = jax.random.split(key, 3)

    # small shapes consistent with Conv2d(3, 3, 3): batch=2, channels=3, 16x16
    x = jax.random.normal(k_x, (2, CIN, 16, 16), dtype=jnp.float32)

    # deterministic parameter init (PyTorch-style uniform bound 1/sqrt(fan_in))
    fan_in = CIN * KH * KW
    bound = 1.0 / (fan_in ** 0.5)
    weight = jax.random.uniform(k_w, (COUT, CIN, KH, KW),
                                minval=-bound, maxval=bound, dtype=jnp.float32)
    bias = jax.random.uniform(k_b, (COUT,),
                              minval=-bound, maxval=bound, dtype=jnp.float32)

    out = conv2d_pallas(x, weight, bias)
    out = jax.block_until_ready(out)

    ref = conv2d_reference(x, weight, bias)
    assert out.shape == (2, COUT, 14, 14)
    assert jnp.allclose(out, ref, atol=1e-5, rtol=1e-5)

    print("KERNEL_OK")
</pallas_src>

<mosaic_0001>
module attributes {stable_mosaic.version = 11 : i64} {
  func.func @conv2d_kernel(%arg0: i32, %arg1: memref<1x3x16x16xf32, #tpu.memory_space<vmem>>, %arg2: memref<81xf32, #tpu.memory_space<smem>>, %arg3: memref<3xf32, #tpu.memory_space<smem>>, %arg4: memref<1x3x14x14xf32, #tpu.memory_space<vmem>>) attributes {dimension_semantics = [#tpu.dimension_semantics<parallel>], iteration_bounds = array<i64: 2>, scalar_prefetch = 0 : i64, scratch_operands = 0 : i64, tpu.core_type = #tpu.core_type<tc>, window_params = [{transform_indices = @transform_0, window_bounds = array<i64: 1, 3, 16, 16>}, {transform_indices = @transform_1, window_bounds = array<i64: 81>}, {transform_indices = @transform_2, window_bounds = array<i64: 3>}, {transform_indices = @transform_3, window_bounds = array<i64: 1, 3, 14, 14>}]} {
    %c0 = arith.constant 0 : index
    %c0_0 = arith.constant 0 : index
    %c0_1 = arith.constant 0 : index
    %c0_2 = arith.constant 0 : index
    %0 = vector.load %arg1[%c0, %c0_0, %c0_1, %c0_2] : memref<1x3x16x16xf32, #tpu.memory_space<vmem>>, vector<1x1x16x16xf32>
    %1 = vector.shape_cast %0 : vector<1x1x16x16xf32> to vector<16x16xf32>
    %c0_3 = arith.constant 0 : index
    %2 = memref.load %arg2[%c0_3] : memref<81xf32, #tpu.memory_space<smem>>
    %3 = vector.broadcast %2 : f32 to vector<16x16xf32>
    %4 = arith.mulf %1, %3 : vector<16x16xf32>
    %c0_4 = arith.constant 0 : index
    %5 = memref.load %arg3[%c0_4] : memref<3xf32, #tpu.memory_space<smem>>
    %6 = vector.broadcast %5 : f32 to vector<16x16xf32>
    %7 = arith.addf %4, %6 : vector<16x16xf32>
    %c27 = arith.constant 27 : index
    %8 = memref.load %arg2[%c27] : memref<81xf32, #tpu.memory_space<smem>>
    %9 = vector.broadcast %8 : f32 to vector<16x16xf32>
    %10 = arith.mulf %1, %9 : vector<16x16xf32>
    %c1 = arith.constant 1 : index
    %11 = memref.load %arg3[%c1] : memref<3xf32, #tpu.memory_space<smem>>
    %12 = vector.broadcast %11 : f32 to vector<16x16xf32>
    %13 = arith.addf %10, %12 : vector<16x16xf32>
    %c54 = arith.constant 54 : index
    %14 = memref.load %arg2[%c54] : memref<81xf32, #tpu.memory_space<smem>>
    %15 = vector.broadcast %14 : f32 to vector<16x16xf32>
    %16 = arith.mulf %1, %15 : vector<16x16xf32>
    %c2 = arith.constant 2 : index
    %17 = memref.load %arg3[%c2] : memref<3xf32, #tpu.memory_space<smem>>
    %18 = vector.broadcast %17 : f32 to vector<16x16xf32>
    %19 = arith.addf %16, %18 : vector<16x16xf32>
    %c15_i32 = arith.constant 15 : i32
    %20 = tpu.dynamic_rotate %1 by %c15_i32 dim 1 : vector<16x16xf32>, i32 -> vector<16x16xf32>
    %c1_5 = arith.constant 1 : index
    %21 = memref.load %arg2[%c1_5] : memref<81xf32, #tpu.memory_space<smem>>
    %22 = vector.broadcast %21 : f32 to vector<16x16xf32>
    %23 = arith.mulf %20, %22 : vector<16x16xf32>
    %24 = arith.addf %7, %23 : vector<16x16xf32>
    %c28 = arith.constant 28 : index
    %25 = memref.load %arg2[%c28] : memref<81xf32, #tpu.memory_space<smem>>
    %26 = vector.broadcast %25 : f32 to vector<16x16xf32>
    %27 = arith.mulf %20, %26 : vector<16x16xf32>
    %28 = arith.addf %13, %27 : vector<16x16xf32>
    %c55 = arith.constant 55 : index
    %29 = memref.load %arg2[%c55] : memref<81xf32, #tpu.memory_space<smem>>
    %30 = vector.broadcast %29 : f32 to vector<16x16xf32>
    %31 = arith.mulf %20, %30 : vector<16x16xf32>
    %32 = arith.addf %19, %31 : vector<16x16xf32>
    %c14_i32 = arith.constant 14 : i32
    %33 = tpu.dynamic_rotate %1 by %c14_i32 dim 1 : vector<16x16xf32>, i32 -> vector<16x16xf32>
    %c2_6 = arith.constant 2 : index
    %34 = memref.load %arg2[%c2_6] : memref<81xf32, #tpu.memory_space<smem>>
    %35 = vector.broadcast %34 : f32 to vector<16x16xf32>
    %36 = arith.mulf %33, %35 : vector<16x16xf32>
    %37 = arith.addf %24, %36 : vector<16x16xf32>
    %c29 = arith.constant 29 : index
    %38 = memref.load %arg2[%c29] : memref<81xf32, #tpu.memory_space<smem>>
    %39 = vector.broadcast %38 : f32 to vector<16x16xf32>
    %40 = arith.mulf %33, %39 : vector<16x16xf32>
    %41 = arith.addf %28, %40 : vector<16x16xf32>
    %c56 = arith.constant 56 : index
    %42 = memref.load %arg2[%c56] : memref<81xf32, #tpu.memory_space<smem>>
    %43 = vector.broadcast %42 : f32 to vector<16x16xf32>
    %44 = arith.mulf %33, %43 : vector<16x16xf32>
    %45 = arith.addf %32, %44 : vector<16x16xf32>
    %c15_i32_7 = arith.constant 15 : i32
    %46 = tpu.dynamic_rotate %1 by %c15_i32_7 dim 0 : vector<16x16xf32>, i32 -> vector<16x16xf32>
    %c3 = arith.constant 3 : index
    %47 = memref.load %arg2[%c3] : memref<81xf32, #tpu.memory_space<smem>>
    %48 = vector.broadcast %47 : f32 to vector<16x16xf32>
    %49 = arith.mulf %46, %48 : vector<16x16xf32>
    %50 = arith.addf %37, %49 : vector<16x16xf32>
    %c30 = arith.constant 30 : index
    %51 = memref.load %arg2[%c30] : memref<81xf32, #tpu.memory_space<smem>>
    %52 = vector.broadcast %51 : f32 to vector<16x16xf32>
    %53 = arith.mulf %46, %52 : vector<16x16xf32>
    %54 = arith.addf %41, %53 : vector<16x16xf32>
    %c57 = arith.constant 57 : index
    %55 = memref.load %arg2[%c57] : memref<81xf32, #tpu.memory_space<smem>>
    %56 = vector.broadcast %55 : f32 to vector<16x16xf32>
    %57 = arith.mulf %46, %56 : vector<16x16xf32>
    %58 = arith.addf %45, %57 : vector<16x16xf32>
    %c15_i32_8 = arith.constant 15 : i32
    %59 = tpu.dynamic_rotate %46 by %c15_i32_8 dim 1 : vector<16x16xf32>, i32 -> vector<16x16xf32>
    %c4 = arith.constant 4 : index
    %60 = memref.load %arg2[%c4] : memref<81xf32, #tpu.memory_space<smem>>
    %61 = vector.broadcast %60 : f32 to vector<16x16xf32>
    %62 = arith.mulf %59, %61 : vector<16x16xf32>
    %63 = arith.addf %50, %62 : vector<16x16xf32>
    %c31 = arith.constant 31 : index
    %64 = memref.load %arg2[%c31] : memref<81xf32, #tpu.memory_space<smem>>
    %65 = vector.broadcast %64 : f32 to vector<16x16xf32>
    %66 = arith.mulf %59, %65 : vector<16x16xf32>
    %67 = arith.addf %54, %66 : vector<16x16xf32>
    %c58 = arith.constant 58 : index
    %68 = memref.load %arg2[%c58] : memref<81xf32, #tpu.memory_space<smem>>
    %69 = vector.broadcast %68 : f32 to vector<16x16xf32>
    %70 = arith.mulf %59, %69 : vector<16x16xf32>
    %71 = arith.addf %58, %70 : vector<16x16xf32>
    %c14_i32_9 = arith.constant 14 : i32
    %72 = tpu.dynamic_rotate %46 by %c14_i32_9 dim 1 : vector<16x16xf32>, i32 -> vector<16x16xf32>
    %c5 = arith.constant 5 : index
    %73 = memref.load %arg2[%c5] : memref<81xf32, #tpu.memory_space<smem>>
    %74 = vector.broadcast %73 : f32 to vector<16x16xf32>
    %75 = arith.mulf %72, %74 : vector<16x16xf32>
    %76 = arith.addf %63, %75 : vector<16x16xf32>
    %c32 = arith.constant 32 : index
    %77 = memref.load %arg2[%c32] : memref<81xf32, #tpu.memory_space<smem>>
    %78 = vector.broadcast %77 : f32 to vector<16x16xf32>
    %79 = arith.mulf %72, %78 : vector<16x16xf32>
    %80 = arith.addf %67, %79 : vector<16x16xf32>
    %c59 = arith.constant 59 : index
    %81 = memref.load %arg2[%c59] : memref<81xf32, #tpu.memory_space<smem>>
    %82 = vector.broadcast %81 : f32 to vector<16x16xf32>
    %83 = arith.mulf %72, %82 : vector<16x16xf32>
    %84 = arith.addf %71, %83 : vector<16x16xf32>
    %c14_i32_10 = arith.constant 14 : i32
    %85 = tpu.dynamic_rotate %1 by %c14_i32_10 dim 0 : vector<16x16xf32>, i32 -> vector<16x16xf32>
    %c6 = arith.constant 6 : index
    %86 = memref.load %arg2[%c6] : memref<81xf32, #tpu.memory_space<smem>>
    %87 = vector.broadcast %86 : f32 to vector<16x16xf32>
    %88 = arith.mulf %85, %87 : vector<16x16xf32>
    %89 = arith.addf %76, %88 : vector<16x16xf32>
    %c33 = arith.constant 33 : index
    %90 = memref.load %arg2[%c33] : memref<81xf32, #tpu.memory_space<smem>>
    %91 = vector.broadcast %90 : f32 to vector<16x16xf32>
    %92 = arith.mulf %85, %91 : vector<16x16xf32>
    %93 = arith.addf %80, %92 : vector<16x16xf32>
    %c60 = arith.constant 60 : index
    %94 = memref.load %arg2[%c60] : memref<81xf32, #tpu.memory_space<smem>>
    %95 = vector.broadcast %94 : f32 to vector<16x16xf32>
    %96 = arith.mulf %85, %95 : vector<16x16xf32>
    %97 = arith.addf %84, %96 : vector<16x16xf32>
    %c15_i32_11 = arith.constant 15 : i32
    %98 = tpu.dynamic_rotate %85 by %c15_i32_11 dim 1 : vector<16x16xf32>, i32 -> vector<16x16xf32>
    %c7 = arith.constant 7 : index
    %99 = memref.load %arg2[%c7] : memref<81xf32, #tpu.memory_space<smem>>
    %100 = vector.broadcast %99 : f32 to vector<16x16xf32>
    %101 = arith.mulf %98, %100 : vector<16x16xf32>
    %102 = arith.addf %89, %101 : vector<16x16xf32>
    %c34 = arith.constant 34 : index
    %103 = memref.load %arg2[%c34] : memref<81xf32, #tpu.memory_space<smem>>
    %104 = vector.broadcast %103 : f32 to vector<16x16xf32>
    %105 = arith.mulf %98, %104 : vector<16x16xf32>
    %106 = arith.addf %93, %105 : vector<16x16xf32>
    %c61 = arith.constant 61 : index
    %107 = memref.load %arg2[%c61] : memref<81xf32, #tpu.memory_space<smem>>
    %108 = vector.broadcast %107 : f32 to vector<16x16xf32>
    %109 = arith.mulf %98, %108 : vector<16x16xf32>
    %110 = arith.addf %97, %109 : vector<16x16xf32>
    %c14_i32_12 = arith.constant 14 : i32
    %111 = tpu.dynamic_rotate %85 by %c14_i32_12 dim 1 : vector<16x16xf32>, i32 -> vector<16x16xf32>
    %c8 = arith.constant 8 : index
    %112 = memref.load %arg2[%c8] : memref<81xf32, #tpu.memory_space<smem>>
    %113 = vector.broadcast %112 : f32 to vector<16x16xf32>
    %114 = arith.mulf %111, %113 : vector<16x16xf32>
    %115 = arith.addf %102, %114 : vector<16x16xf32>
    %c35 = arith.constant 35 : index
    %116 = memref.load %arg2[%c35] : memref<81xf32, #tpu.memory_space<smem>>
    %117 = vector.broadcast %116 : f32 to vector<16x16xf32>
    %118 = arith.mulf %111, %117 : vector<16x16xf32>
    %119 = arith.addf %106, %118 : vector<16x16xf32>
    %c62 = arith.constant 62 : index
    %120 = memref.load %arg2[%c62] : memref<81xf32, #tpu.memory_space<smem>>
    %121 = vector.broadcast %120 : f32 to vector<16x16xf32>
    %122 = arith.mulf %111, %121 : vector<16x16xf32>
    %123 = arith.addf %110, %122 : vector<16x16xf32>
    %c0_13 = arith.constant 0 : index
    %c1_14 = arith.constant 1 : index
    %c0_15 = arith.constant 0 : index
    %c0_16 = arith.constant 0 : index
    %124 = vector.load %arg1[%c0_13, %c1_14, %c0_15, %c0_16] : memref<1x3x16x16xf32, #tpu.memory_space<vmem>>, vector<1x1x16x16xf32>
    %125 = vector.shape_cast %124 : vector<1x1x16x16xf32> to vector<16x16xf32>
    %c9 = arith.constant 9 : index
    %126 = memref.load %arg2[%c9] : memref<81xf32, #tpu.memory_space<smem>>
    %127 = vector.broadcast %126 : f32 to vector<16x16xf32>
    %128 = arith.mulf %125, %127 : vector<16x16xf32>
    %129 = arith.addf %115, %128 : vector<16x16xf32>
    %c36 = arith.constant 36 : index
    %130 = memref.load %arg2[%c36] : memref<81xf32, #tpu.memory_space<smem>>
    %131 = vector.broadcast %130 : f32 to vector<16x16xf32>
    %132 = arith.mulf %125, %131 : vector<16x16xf32>
    %133 = arith.addf %119, %132 : vector<16x16xf32>
    %c63 = arith.constant 63 : index
    %134 = memref.load %arg2[%c63] : memref<81xf32, #tpu.memory_space<smem>>
    %135 = vector.broadcast %134 : f32 to vector<16x16xf32>
    %136 = arith.mulf %125, %135 : vector<16x16xf32>
    %137 = arith.addf %123, %136 : vector<16x16xf32>
    %c15_i32_17 = arith.constant 15 : i32
    %138 = tpu.dynamic_rotate %125 by %c15_i32_17 dim 1 : vector<16x16xf32>, i32 -> vector<16x16xf32>
    %c10 = arith.constant 10 : index
    %139 = memref.load %arg2[%c10] : memref<81xf32, #tpu.memory_space<smem>>
    %140 = vector.broadcast %139 : f32 to vector<16x16xf32>
    %141 = arith.mulf %138, %140 : vector<16x16xf32>
    %142 = arith.addf %129, %141 : vector<16x16xf32>
    %c37 = arith.constant 37 : index
    %143 = memref.load %arg2[%c37] : memref<81xf32, #tpu.memory_space<smem>>
    %144 = vector.broadcast %143 : f32 to vector<16x16xf32>
    %145 = arith.mulf %138, %144 : vector<16x16xf32>
    %146 = arith.addf %133, %145 : vector<16x16xf32>
    %c64 = arith.constant 64 : index
    %147 = memref.load %arg2[%c64] : memref<81xf32, #tpu.memory_space<smem>>
    %148 = vector.broadcast %147 : f32 to vector<16x16xf32>
    %149 = arith.mulf %138, %148 : vector<16x16xf32>
    %150 = arith.addf %137, %149 : vector<16x16xf32>
    %c14_i32_18 = arith.constant 14 : i32
    %151 = tpu.dynamic_rotate %125 by %c14_i32_18 dim 1 : vector<16x16xf32>, i32 -> vector<16x16xf32>
    %c11 = arith.constant 11 : index
    %152 = memref.load %arg2[%c11] : memref<81xf32, #tpu.memory_space<smem>>
    %153 = vector.broadcast %152 : f32 to vector<16x16xf32>
    %154 = arith.mulf %151, %153 : vector<16x16xf32>
    %155 = arith.addf %142, %154 : vector<16x16xf32>
    %c38 = arith.constant 38 : index
    %156 = memref.load %arg2[%c38] : memref<81xf32, #tpu.memory_space<smem>>
    %157 = vector.broadcast %156 : f32 to vector<16x16xf32>
    %158 = arith.mulf %151, %157 : vector<16x16xf32>
    %159 = arith.addf %146, %158 : vector<16x16xf32>
    %c65 = arith.constant 65 : index
    %160 = memref.load %arg2[%c65] : memref<81xf32, #tpu.memory_space<smem>>
    %161 = vector.broadcast %160 : f32 to vector<16x16xf32>
    %162 = arith.mulf %151, %161 : vector<16x16xf32>
    %163 = arith.addf %150, %162 : vector<16x16xf32>
    %c15_i32_19 = arith.constant 15 : i32
    %164 = tpu.dynamic_rotate %125 by %c15_i32_19 dim 0 : vector<16x16xf32>, i32 -> vector<16x16xf32>
    %c12 = arith.constant 12 : index
    %165 = memref.load %arg2[%c12] : memref<81xf32, #tpu.memory_space<smem>>
    %166 = vector.broadcast %165 : f32 to vector<16x16xf32>
    %167 = arith.mulf %164, %166 : vector<16x16xf32>
    %168 = arith.addf %155, %167 : vector<16x16xf32>
    %c39 = arith.constant 39 : index
    %169 = memref.load %arg2[%c39] : memref<81xf32, #tpu.memory_space<smem>>
    %170 = vector.broadcast %169 : f32 to vector<16x16xf32>
    %171 = arith.mulf %164, %170 : vector<16x16xf32>
    %172 = arith.addf %159, %171 : vector<16x16xf32>
    %c66 = arith.constant 66 : index
    %173 = memref.load %arg2[%c66] : memref<81xf32, #tpu.memory_space<smem>>
    %174 = vector.broadcast %173 : f32 to vector<16x16xf32>
    %175 = arith.mulf %164, %174 : vector<16x16xf32>
    %176 = arith.addf %163, %175 : vector<16x16xf32>
    %c15_i32_20 = arith.constant 15 : i32
    %177 = tpu.dynamic_rotate %164 by %c15_i32_20 dim 1 : vector<16x16xf32>, i32 -> vector<16x16xf32>
    %c13 = arith.constant 13 : index
    %178 = memref.load %arg2[%c13] : memref<81xf32, #tpu.memory_space<smem>>
    %179 = vector.broadcast %178 : f32 to vector<16x16xf32>
    %180 = arith.mulf %177, %179 : vector<16x16xf32>
    %181 = arith.addf %168, %180 : vector<16x16xf32>
    %c40 = arith.constant 40 : index
    %182 = memref.load %arg2[%c40] : memref<81xf32, #tpu.memory_space<smem>>
    %183 = vector.broadcast %182 : f32 to vector<16x16xf32>
    %184 = arith.mulf %177, %183 : vector<16x16xf32>
    %185 = arith.addf %172, %184 : vector<16x16xf32>
    %c67 = arith.constant 67 : index
    %186 = memref.load %arg2[%c67] : memref<81xf32, #tpu.memory_space<smem>>
    %187 = vector.broadcast %186 : f32 to vector<16x16xf32>
    %188 = arith.mulf %177, %187 : vector<16x16xf32>
    %189 = arith.addf %176, %188 : vector<16x16xf32>
    %c14_i32_21 = arith.constant 14 : i32
    %190 = tpu.dynamic_rotate %164 by %c14_i32_21 dim 1 : vector<16x16xf32>, i32 -> vector<16x16xf32>
    %c14 = arith.constant 14 : index
    %191 = memref.load %arg2[%c14] : memref<81xf32, #tpu.memory_space<smem>>
    %192 = vector.broadcast %191 : f32 to vector<16x16xf32>
    %193 = arith.mulf %190, %192 : vector<16x16xf32>
    %194 = arith.addf %181, %193 : vector<16x16xf32>
    %c41 = arith.constant 41 : index
    %195 = memref.load %arg2[%c41] : memref<81xf32, #tpu.memory_space<smem>>
    %196 = vector.broadcast %195 : f32 to vector<16x16xf32>
    %197 = arith.mulf %190, %196 : vector<16x16xf32>
    %198 = arith.addf %185, %197 : vector<16x16xf32>
    %c68 = arith.constant 68 : index
    %199 = memref.load %arg2[%c68] : memref<81xf32, #tpu.memory_space<smem>>
    %200 = vector.broadcast %199 : f32 to vector<16x16xf32>
    %201 = arith.mulf %190, %200 : vector<16x16xf32>
    %202 = arith.addf %189, %201 : vector<16x16xf32>
    %c14_i32_22 = arith.constant 14 : i32
    %203 = tpu.dynamic_rotate %125 by %c14_i32_22 dim 0 : vector<16x16xf32>, i32 -> vector<16x16xf32>
    %c15 = arith.constant 15 : index
    %204 = memref.load %arg2[%c15] : memref<81xf32, #tpu.memory_space<smem>>
    %205 = vector.broadcast %204 : f32 to vector<16x16xf32>
    %206 = arith.mulf %203, %205 : vector<16x16xf32>
    %207 = arith.addf %194, %206 : vector<16x16xf32>
    %c42 = arith.constant 42 : index
    %208 = memref.load %arg2[%c42] : memref<81xf32, #tpu.memory_space<smem>>
    %209 = vector.broadcast %208 : f32 to vector<16x16xf32>
    %210 = arith.mulf %203, %209 : vector<16x16xf32>
    %211 = arith.addf %198, %210 : vector<16x16xf32>
    %c69 = arith.constant 69 : index
    %212 = memref.load %arg2[%c69] : memref<81xf32, #tpu.memory_space<smem>>
    %213 = vector.broadcast %212 : f32 to vector<16x16xf32>
    %214 = arith.mulf %203, %213 : vector<16x16xf32>
    %215 = arith.addf %202, %214 : vector<16x16xf32>
    %c15_i32_23 = arith.constant 15 : i32
    %216 = tpu.dynamic_rotate %203 by %c15_i32_23 dim 1 : vector<16x16xf32>, i32 -> vector<16x16xf32>
    %c16 = arith.constant 16 : index
    %217 = memref.load %arg2[%c16] : memref<81xf32, #tpu.memory_space<smem>>
    %218 = vector.broadcast %217 : f32 to vector<16x16xf32>
    %219 = arith.mulf %216, %218 : vector<16x16xf32>
    %220 = arith.addf %207, %219 : vector<16x16xf32>
    %c43 = arith.constant 43 : index
    %221 = memref.load %arg2[%c43] : memref<81xf32, #tpu.memory_space<smem>>
    %222 = vector.broadcast %221 : f32 to vector<16x16xf32>
    %223 = arith.mulf %216, %222 : vector<16x16xf32>
    %224 = arith.addf %211, %223 : vector<16x16xf32>
    %c70 = arith.constant 70 : index
    %225 = memref.load %arg2[%c70] : memref<81xf32, #tpu.memory_space<smem>>
    %226 = vector.broadcast %225 : f32 to vector<16x16xf32>
    %227 = arith.mulf %216, %226 : vector<16x16xf32>
    %228 = arith.addf %215, %227 : vector<16x16xf32>
    %c14_i32_24 = arith.constant 14 : i32
    %229 = tpu.dynamic_rotate %203 by %c14_i32_24 dim 1 : vector<16x16xf32>, i32 -> vector<16x16xf32>
    %c17 = arith.constant 17 : index
    %230 = memref.load %arg2[%c17] : memref<81xf32, #tpu.memory_space<smem>>
    %231 = vector.broadcast %230 : f32 to vector<16x16xf32>
    %232 = arith.mulf %229, %231 : vector<16x16xf32>
    %233 = arith.addf %220, %232 : vector<16x16xf32>
    %c44 = arith.constant 44 : index
    %234 = memref.load %arg2[%c44] : memref<81xf32, #tpu.memory_space<smem>>
    %235 = vector.broadcast %234 : f32 to vector<16x16xf32>
    %236 = arith.mulf %229, %235 : vector<16x16xf32>
    %237 = arith.addf %224, %236 : vector<16x16xf32>
    %c71 = arith.constant 71 : index
    %238 = memref.load %arg2[%c71] : memref<81xf32, #tpu.memory_space<smem>>
    %239 = vector.broadcast %238 : f32 to vector<16x16xf32>
    %240 = arith.mulf %229, %239 : vector<16x16xf32>
    %241 = arith.addf %228, %240 : vector<16x16xf32>
    %c0_25 = arith.constant 0 : index
    %c2_26 = arith.constant 2 : index
    %c0_27 = arith.constant 0 : index
    %c0_28 = arith.constant 0 : index
    %242 = vector.load %arg1[%c0_25, %c2_26, %c0_27, %c0_28] : memref<1x3x16x16xf32, #tpu.memory_space<vmem>>, vector<1x1x16x16xf32>
    %243 = vector.shape_cast %242 : vector<1x1x16x16xf32> to vector<16x16xf32>
    %c18 = arith.constant 18 : index
    %244 = memref.load %arg2[%c18] : memref<81xf32, #tpu.memory_space<smem>>
    %245 = vector.broadcast %244 : f32 to vector<16x16xf32>
    %246 = arith.mulf %243, %245 : vector<16x16xf32>
    %247 = arith.addf %233, %246 : vector<16x16xf32>
    %c45 = arith.constant 45 : index
    %248 = memref.load %arg2[%c45] : memref<81xf32, #tpu.memory_space<smem>>
    %249 = vector.broadcast %248 : f32 to vector<16x16xf32>
    %250 = arith.mulf %243, %249 : vector<16x16xf32>
    %251 = arith.addf %237, %250 : vector<16x16xf32>
    %c72 = arith.constant 72 : index
    %252 = memref.load %arg2[%c72] : memref<81xf32, #tpu.memory_space<smem>>
    %253 = vector.broadcast %252 : f32 to vector<16x16xf32>
    %254 = arith.mulf %243, %253 : vector<16x16xf32>
    %255 = arith.addf %241, %254 : vector<16x16xf32>
    %c15_i32_29 = arith.constant 15 : i32
    %256 = tpu.dynamic_rotate %243 by %c15_i32_29 dim 1 : vector<16x16xf32>, i32 -> vector<16x16xf32>
    %c19 = arith.constant 19 : index
    %257 = memref.load %arg2[%c19] : memref<81xf32, #tpu.memory_space<smem>>
    %258 = vector.broadcast %257 : f32 to vector<16x16xf32>
    %259 = arith.mulf %256, %258 : vector<16x16xf32>
    %260 = arith.addf %247, %259 : vector<16x16xf32>
    %c46 = arith.constant 46 : index
    %261 = memref.load %arg2[%c46] : memref<81xf32, #tpu.memory_space<smem>>
    %262 = vector.broadcast %261 : f32 to vector<16x16xf32>
    %263 = arith.mulf %256, %262 : vector<16x16xf32>
    %264 = arith.addf %251, %263 : vector<16x16xf32>
    %c73 = arith.constant 73 : index
    %265 = memref.load %arg2[%c73] : memref<81xf32, #tpu.memory_space<smem>>
    %266 = vector.broadcast %265 : f32 to vector<16x16xf32>
    %267 = arith.mulf %256, %266 : vector<16x16xf32>
    %268 = arith.addf %255, %267 : vector<16x16xf32>
    %c14_i32_30 = arith.constant 14 : i32
    %269 = tpu.dynamic_rotate %243 by %c14_i32_30 dim 1 : vector<16x16xf32>, i32 -> vector<16x16xf32>
    %c20 = arith.constant 20 : index
    %270 = memref.load %arg2[%c20] : memref<81xf32, #tpu.memory_space<smem>>
    %271 = vector.broadcast %270 : f32 to vector<16x16xf32>
    %272 = arith.mulf %269, %271 : vector<16x16xf32>
    %273 = arith.addf %260, %272 : vector<16x16xf32>
    %c47 = arith.constant 47 : index
    %274 = memref.load %arg2[%c47] : memref<81xf32, #tpu.memory_space<smem>>
    %275 = vector.broadcast %274 : f32 to vector<16x16xf32>
    %276 = arith.mulf %269, %275 : vector<16x16xf32>
    %277 = arith.addf %264, %276 : vector<16x16xf32>
    %c74 = arith.constant 74 : index
    %278 = memref.load %arg2[%c74] : memref<81xf32, #tpu.memory_space<smem>>
    %279 = vector.broadcast %278 : f32 to vector<16x16xf32>
    %280 = arith.mulf %269, %279 : vector<16x16xf32>
    %281 = arith.addf %268, %280 : vector<16x16xf32>
    %c15_i32_31 = arith.constant 15 : i32
    %282 = tpu.dynamic_rotate %243 by %c15_i32_31 dim 0 : vector<16x16xf32>, i32 -> vector<16x16xf32>
    %c21 = arith.constant 21 : index
    %283 = memref.load %arg2[%c21] : memref<81xf32, #tpu.memory_space<smem>>
    %284 = vector.broadcast %283 : f32 to vector<16x16xf32>
    %285 = arith.mulf %282, %284 : vector<16x16xf32>
    %286 = arith.addf %273, %285 : vector<16x16xf32>
    %c48 = arith.constant 48 : index
    %287 = memref.load %arg2[%c48] : memref<81xf32, #tpu.memory_space<smem>>
    %288 = vector.broadcast %287 : f32 to vector<16x16xf32>
    %289 = arith.mulf %282, %288 : vector<16x16xf32>
    %290 = arith.addf %277, %289 : vector<16x16xf32>
    %c75 = arith.constant 75 : index
    %291 = memref.load %arg2[%c75] : memref<81xf32, #tpu.memory_space<smem>>
    %292 = vector.broadcast %291 : f32 to vector<16x16xf32>
    %293 = arith.mulf %282, %292 : vector<16x16xf32>
    %294 = arith.addf %281, %293 : vector<16x16xf32>
    %c15_i32_32 = arith.constant 15 : i32
    %295 = tpu.dynamic_rotate %282 by %c15_i32_32 dim 1 : vector<16x16xf32>, i32 -> vector<16x16xf32>
    %c22 = arith.constant 22 : index
    %296 = memref.load %arg2[%c22] : memref<81xf32, #tpu.memory_space<smem>>
    %297 = vector.broadcast %296 : f32 to vector<16x16xf32>
    %298 = arith.mulf %295, %297 : vector<16x16xf32>
    %299 = arith.addf %286, %298 : vector<16x16xf32>
    %c49 = arith.constant 49 : index
    %300 = memref.load %arg2[%c49] : memref<81xf32, #tpu.memory_space<smem>>
    %301 = vector.broadcast %300 : f32 to vector<16x16xf32>
    %302 = arith.mulf %295, %301 : vector<16x16xf32>
    %303 = arith.addf %290, %302 : vector<16x16xf32>
    %c76 = arith.constant 76 : index
    %304 = memref.load %arg2[%c76] : memref<81xf32, #tpu.memory_space<smem>>
    %305 = vector.broadcast %304 : f32 to vector<16x16xf32>
    %306 = arith.mulf %295, %305 : vector<16x16xf32>
    %307 = arith.addf %294, %306 : vector<16x16xf32>
    %c14_i32_33 = arith.constant 14 : i32
    %308 = tpu.dynamic_rotate %282 by %c14_i32_33 dim 1 : vector<16x16xf32>, i32 -> vector<16x16xf32>
    %c23 = arith.constant 23 : index
    %309 = memref.load %arg2[%c23] : memref<81xf32, #tpu.memory_space<smem>>
    %310 = vector.broadcast %309 : f32 to vector<16x16xf32>
    %311 = arith.mulf %308, %310 : vector<16x16xf32>
    %312 = arith.addf %299, %311 : vector<16x16xf32>
    %c50 = arith.constant 50 : index
    %313 = memref.load %arg2[%c50] : memref<81xf32, #tpu.memory_space<smem>>
    %314 = vector.broadcast %313 : f32 to vector<16x16xf32>
    %315 = arith.mulf %308, %314 : vector<16x16xf32>
    %316 = arith.addf %303, %315 : vector<16x16xf32>
    %c77 = arith.constant 77 : index
    %317 = memref.load %arg2[%c77] : memref<81xf32, #tpu.memory_space<smem>>
    %318 = vector.broadcast %317 : f32 to vector<16x16xf32>
    %319 = arith.mulf %308, %318 : vector<16x16xf32>
    %320 = arith.addf %307, %319 : vector<16x16xf32>
    %c14_i32_34 = arith.constant 14 : i32
    %321 = tpu.dynamic_rotate %243 by %c14_i32_34 dim 0 : vector<16x16xf32>, i32 -> vector<16x16xf32>
    %c24 = arith.constant 24 : index
    %322 = memref.load %arg2[%c24] : memref<81xf32, #tpu.memory_space<smem>>
    %323 = vector.broadcast %322 : f32 to vector<16x16xf32>
    %324 = arith.mulf %321, %323 : vector<16x16xf32>
    %325 = arith.addf %312, %324 : vector<16x16xf32>
    %c51 = arith.constant 51 : index
    %326 = memref.load %arg2[%c51] : memref<81xf32, #tpu.memory_space<smem>>
    %327 = vector.broadcast %326 : f32 to vector<16x16xf32>
    %328 = arith.mulf %321, %327 : vector<16x16xf32>
    %329 = arith.addf %316, %328 : vector<16x16xf32>
    %c78 = arith.constant 78 : index
    %330 = memref.load %arg2[%c78] : memref<81xf32, #tpu.memory_space<smem>>
    %331 = vector.broadcast %330 : f32 to vector<16x16xf32>
    %332 = arith.mulf %321, %331 : vector<16x16xf32>
    %333 = arith.addf %320, %332 : vector<16x16xf32>
    %c15_i32_35 = arith.constant 15 : i32
    %334 = tpu.dynamic_rotate %321 by %c15_i32_35 dim 1 : vector<16x16xf32>, i32 -> vector<16x16xf32>
    %c25 = arith.constant 25 : index
    %335 = memref.load %arg2[%c25] : memref<81xf32, #tpu.memory_space<smem>>
    %336 = vector.broadcast %335 : f32 to vector<16x16xf32>
    %337 = arith.mulf %334, %336 : vector<16x16xf32>
    %338 = arith.addf %325, %337 : vector<16x16xf32>
    %c52 = arith.constant 52 : index
    %339 = memref.load %arg2[%c52] : memref<81xf32, #tpu.memory_space<smem>>
    %340 = vector.broadcast %339 : f32 to vector<16x16xf32>
    %341 = arith.mulf %334, %340 : vector<16x16xf32>
    %342 = arith.addf %329, %341 : vector<16x16xf32>
    %c79 = arith.constant 79 : index
    %343 = memref.load %arg2[%c79] : memref<81xf32, #tpu.memory_space<smem>>
    %344 = vector.broadcast %343 : f32 to vector<16x16xf32>
    %345 = arith.mulf %334, %344 : vector<16x16xf32>
    %346 = arith.addf %333, %345 : vector<16x16xf32>
    %c14_i32_36 = arith.constant 14 : i32
    %347 = tpu.dynamic_rotate %321 by %c14_i32_36 dim 1 : vector<16x16xf32>, i32 -> vector<16x16xf32>
    %c26 = arith.constant 26 : index
    %348 = memref.load %arg2[%c26] : memref<81xf32, #tpu.memory_space<smem>>
    %349 = vector.broadcast %348 : f32 to vector<16x16xf32>
    %350 = arith.mulf %347, %349 : vector<16x16xf32>
    %351 = arith.addf %338, %350 : vector<16x16xf32>
    %c53 = arith.constant 53 : index
    %352 = memref.load %arg2[%c53] : memref<81xf32, #tpu.memory_space<smem>>
    %353 = vector.broadcast %352 : f32 to vector<16x16xf32>
    %354 = arith.mulf %347, %353 : vector<16x16xf32>
    %355 = arith.addf %342, %354 : vector<16x16xf32>
    %c80 = arith.constant 80 : index
    %356 = memref.load %arg2[%c80] : memref<81xf32, #tpu.memory_space<smem>>
    %357 = vector.broadcast %356 : f32 to vector<16x16xf32>
    %358 = arith.mulf %347, %357 : vector<16x16xf32>
    %359 = arith.addf %346, %358 : vector<16x16xf32>
    %360 = vector.extract_strided_slice %351 {offsets = [0, 0], sizes = [14, 14], strides = [1, 1]} : vector<16x16xf32> to vector<14x14xf32>
    %c0_37 = arith.constant 0 : index
    %c0_38 = arith.constant 0 : index
    %c0_39 = arith.constant 0 : index
    %c0_40 = arith.constant 0 : index
    %361 = vector.load %arg4[%c0_37, %c0_38, %c0_39, %c0_40] : memref<1x3x14x14xf32, #tpu.memory_space<vmem>>, vector<1x1x14x14xf32>
    %362 = vector.shape_cast %361 : vector<1x1x14x14xf32> to vector<14x14xf32>
    %363 = vector.shape_cast %360 : vector<14x14xf32> to vector<1x1x14x14xf32>
    tpu.vector_store %arg4[%c0_37, %c0_38, %c0_39, %c0_40], %363 {strides = array<i32>} : memref<1x3x14x14xf32, #tpu.memory_space<vmem>>, vector<1x1x14x14xf32>,
    %364 = vector.extract_strided_slice %355 {offsets = [0, 0], sizes = [14, 14], strides = [1, 1]} : vector<16x16xf32> to vector<14x14xf32>
    %c0_41 = arith.constant 0 : index
    %c1_42 = arith.constant 1 : index
    %c0_43 = arith.constant 0 : index
    %c0_44 = arith.constant 0 : index
    %365 = vector.load %arg4[%c0_41, %c1_42, %c0_43, %c0_44] : memref<1x3x14x14xf32, #tpu.memory_space<vmem>>, vector<1x1x14x14xf32>
    %366 = vector.shape_cast %365 : vector<1x1x14x14xf32> to vector<14x14xf32>
    %367 = vector.shape_cast %364 : vector<14x14xf32> to vector<1x1x14x14xf32>
    tpu.vector_store %arg4[%c0_41, %c1_42, %c0_43, %c0_44], %367 {strides = array<i32>} : memref<1x3x14x14xf32, #tpu.memory_space<vmem>>, vector<1x1x14x14xf32>,
    %368 = vector.extract_strided_slice %359 {offsets = [0, 0], sizes = [14, 14], strides = [1, 1]} : vector<16x16xf32> to vector<14x14xf32>
    %c0_45 = arith.constant 0 : index
    %c2_46 = arith.constant 2 : index
    %c0_47 = arith.constant 0 : index
    %c0_48 = arith.constant 0 : index
    %369 = vector.load %arg4[%c0_45, %c2_46, %c0_47, %c0_48] : memref<1x3x14x14xf32, #tpu.memory_space<vmem>>, vector<1x1x14x14xf32>
    %370 = vector.shape_cast %369 : vector<1x1x14x14xf32> to vector<14x14xf32>
    %371 = vector.shape_cast %368 : vector<14x14xf32> to vector<1x1x14x14xf32>
    tpu.vector_store %arg4[%c0_45, %c2_46, %c0_47, %c0_48], %371 {strides = array<i32>} : memref<1x3x14x14xf32, #tpu.memory_space<vmem>>, vector<1x1x14x14xf32>,
    return
  }
  func.func @transform_0(%arg0: i32) -> (i32, i32, i32, i32) {
    %c0_i32 = arith.constant 0 : i32
    %c0_i32_0 = arith.constant 0 : i32
    %c0_i32_1 = arith.constant 0 : i32
    %c0_i32_2 = arith.constant 0 : i32
    return %arg0, %c0_i32, %c0_i32_0, %c0_i32_1 : i32, i32, i32, i32
  }
  func.func @transform_1(%arg0: i32) -> i32 {
    %c0_i32 = arith.constant 0 : i32
    %c0_i32_0 = arith.constant 0 : i32
    return %c0_i32 : i32
  }
  func.func @transform_2(%arg0: i32) -> i32 {
    %c0_i32 = arith.constant 0 : i32
    %c0_i32_0 = arith.constant 0 : i32
    return %c0_i32 : i32
  }
  func.func @transform_3(%arg0: i32) -> (i32, i32, i32, i32) {
    %c0_i32 = arith.constant 0 : i32
    %c0_i32_0 = arith.constant 0 : i32
    %c0_i32_1 = arith.constant 0 : i32
    %c0_i32_2 = arith.constant 0 : i32
    return %arg0, %c0_i32, %c0_i32_0, %c0_i32_1 : i32, i32, i32, i32
  }
}

</mosaic_0001>

<bundles_post_ra>
// kernel: tpu_custom_call.1
= control target key start
LH: loop header
LB: loop body
LE: loop exit
PB: predicated region body
PF: predicated region fallthrough
CT: control target
= control target key end

     0   :  { %8 = vsyncpa [#allocation3], 0  ;;  %s2595_s0 = inlined_call_operand.hbm [shape: f32[2,3,16,16], index: 0, kind: input, shape index: {}]   ;;  %s2596_s1 = inlined_call_operand.vmem [shape: f32[81], index: 1, kind: input, shape index: {}]   ;;  %s2597_s2 = inlined_call_operand.vmem [shape: f32[3], index: 2, kind: input, shape index: {}]   ;;  %s2598_s3 = inlined_call_operand.vmem [shape: f32[2,3,14,14], index: 3, kind: output, shape index: {}]  }
   0x1   :  { %10 = vsyncpa [#allocation3 + $0x1], 0 }
   0x2   :  { %11 = vsyncpa [#allocation4], 0 }
   0x3   :  { %12 = vsyncpa [#allocation7], 0  ;;  %s1693_s12 = smov 0   ;;  %s1695_s13 = smov 0  }
   0x4   :  { %s1697_s14 = smov 0   ;;  %s1699_s15 = smov 0  }
   0x5 LB: > { %s1712_s16 = sadd.s32 4294967295, %s1663_s15   ;;  %s1715_s17 = sadd.s32 1, %s1663_s15   ;;  %s1663_s15 = sphi %s1699_s15, %s2652_s15   ;;  %s1659_s14 = sphi %s1697_s14, %s2651_s14   ;;  %s1655_s13 = sphi %s1695_s13, %s2650_s13   ;;  %s1651_s12 = sphi %s1693_s12, %s2649_s12  }
   0x6   : > { %s22_s18 = ssub.s32 %s1663_s15, %s1715_s17  ;;  %s25_s19 = sadd.s32 1, %s1659_s14 }
   0x7   : > { %p23_p0 = scmp.eq.s32.totalorder %s22_s18, 0  ;;  %p32_p1 = scmp.ne.s32.totalorder %s1659_s14, %s1655_s13 }
   0x8   : > { %p33_p2 = scmp.eq.s32.totalorder %s1663_s15, 0  ;;  %p38_p3 = scmp.ne.s32.totalorder %s1655_s13, %s1651_s12 }
   0x9   : > { %s1725_s20 = scalar_select %p23_p0, %s1659_s14, %s25_s19  }
   0xa   : > { %p1727_p4 = por %p33_p2, %p32_p1  ;;  %p2599_p5 = scmp.eq.s32.totalorder %s1712_s16, 0 }
   0xb   : > { %p1387_p6 = scmp.ge.s32.totalorder %s1663_s15, 1  ;;  %p117_p7 = scmp.lt.s32.totalorder %s1663_s15, 3 }
   0xc   : > { %p1736_p8 = por %p2599_p5, %p38_p3  ;;  %s130_s26 = sshll.u32 %s2596_s1, 4  ;;  %s131_s26 = int_to_ptr.vmem [resolvable:$true] %s130_s26 }
   0xd   : > { %p1740_p9 = pnand %p1387_p6, %p117_p7  ;;  %p1515_p11 = scmp.lt.s32.totalorder %s1663_s15, 2 }
   0xe   : > { %s2610_s22 = scalar_select %p1736_p8, 1, 0 }
   0xf   : > { %s2611_s23 = scalar_select %p1740_p9, 1, 0 }
  0x10   : > { %p1502_p10 = pneg %p1740_p9  ;;  %s141_s29 = sshll.u32 %s2597_s2, 4  ;;  %s142_s29 = int_to_ptr.vmem [resolvable:$true] %s141_s29 }
  0x11   : > { %p1761_p13 = pnand %p1515_p11, %p1727_p4  ;;  %s152_s5 = sand.u32 1, %s1659_s14  }
  0x12   : > { %p1755_p12 = pnand %p1502_p10, %p2599_p5  ;;  %s1561_s6 = scalar_lea.vmem %s131_s26, 16 }
  0x13   : > { %s2613_s4 = scalar_select %p1761_p13, 1, 0 }
  0x14   : > { %p1562_p0 = scmp.ne.s32.totalorder %s131_s26, %s1561_s6  ;;  %p1563_p1 = pneg %p1755_p12 }
  0x15   : > { %p1569_p6 = scmp.lt.s32.totalorder %s131_s26, %s131_s26  ;;  %p1570_p7 = scmp.lt.s32.totalorder %s1561_s6, %s1561_s6 }
  0x16   : > { %p1564_p2 = pnand %p1563_p1, %p1562_p0 }
  0x17   : > { %p1571_p10 = por %p1570_p7, %p1569_p6 }
  0x18   : > { %p1565_p3 = pneg %p1564_p2 }
  0x1a   : > { %p1572_p5 = pnand %p1571_p10, %p1565_p3 }
  0x1c   : > { %1575 = shalt.err (!%p1572_p5)
}
  0x1d   : > { %s1665_s7 = smov [#allocation5]   ;;  %s1576_s8 = scalar_lea.vmem %s142_s29, 16 }
  0x1e   : > { %1505 = dma.vmem_to_smem (!%p1755_p12), %s131_s26, 16, %s1665_s7, [#allocation4]  }
  0x1f   : > { %p1577_p4 = scmp.ne.s32.totalorder %s142_s29, %s1576_s8  ;;  %p1584_p9 = scmp.lt.s32.totalorder %s142_s29, %s142_s29 }
  0x20   : > { %p1585_p13 = scmp.lt.s32.totalorder %s1576_s8, %s1576_s8 }
  0x21   : > { %p1579_p11 = pnand %p1577_p4, %p1563_p1 }
  0x22   : > { %p1586_p0 = por %p1585_p13, %p1584_p9 }
  0x23   : > { %p1580_p8 = pneg %p1579_p11 }
  0x25   : > { %p1587_p2 = pnand %p1586_p0, %p1580_p8 }
  0x27   : > { %1590 = shalt.err (!%p1587_p2)
}
  0x28   : > { %s1666_s9 = smov [#allocation6]   ;;  %s1488_s10 = smul.u32 48, %s152_s5 }
  0x29   : > { %1508 = dma.vmem_to_smem (!%p1755_p12), %s142_s29, 16, %s1666_s9, [#allocation7]  }
  0x2a   : > { %s1489_s11 = smul.u32 768, %s1663_s15  ;;  %s156_s21 = scalar_lea.vmem [#allocation2], %s1488_s10 }
  0x2b   : > { %s163_s24 = sshll.u32 %s156_s21, 4  ;;  %s1784_s25 = scalar_lea.sflag [#allocation3], %s152_s5  ;;  %s1780_s24 = int_to_ptr.vmem [resolvable:$true] %s163_s24 }
  0x2c   : > { %s1778_s19 = scalar_lea.hbm %s2595_s0, %s1489_s11  ;;  %p2614_p8 = scmp.ne.s32.totalorder %s2613_s4, 0 }
  0x2d   : > { %s1591_s26 = scalar_lea.hbm %s1778_s19, 768  ;;  %s1596_s28 = scalar_lea.hbm %s2595_s0, 1536 }
  0x2e   : > { %p1592_p5 = scmp.ne.s32.totalorder %s1778_s19, %s1591_s26  ;;  %p1593_p9 = pneg %p2614_p8 }
  0x2f   : > { %p1597_p1 = scmp.lt.u32.totalorder %s1778_s19, %s2595_s0  ;;  %p1598_p3 = scmp.lt.u32.totalorder %s1596_s28, %s1591_s26 }
  0x30   : > { %p1594_p12 = pnand %p1593_p9, %p1592_p5  ;;  %p1600_p7 = scmp.lt.u32.totalorder %s1591_s26, %s1778_s19 }
  0x31   : > { %p1599_p6 = por %p1598_p3, %p1597_p1 }
  0x32   : > { %p1595_p13 = pneg %p1594_p12 }
  0x33   : > { %p1601_p10 = por %p1600_p7, %p1599_p6 }
  0x35   : > { %p1602_p4 = pnand %p1601_p10, %p1595_p13 }
  0x37   : > { %1605 = shalt.err (!%p1602_p4)
}
  0x38   : > { %s1606_s5 = scalar_lea.vmem %s1780_s24, 768  ;;  %s1667_s6 = smov [#allocation2]  }
  0x39   : > { %p1607_p11 = scmp.ne.s32.totalorder %s1780_s24, %s1606_s5  ;;  %s1611_s7 = sshll.u32 %s1667_s6, 4  ;;  %s1612_s7 = int_to_ptr.vmem [resolvable:$false] %s1611_s7 }
  0x3a   : > { %s1613_s8 = scalar_lea.vmem %s1612_s7, 1536  ;;  %p1614_p5 = scmp.lt.s32.totalorder %s1780_s24, %s1612_s7 }
  0x3b   : > { %p1609_p0 = pnand %p1607_p11, %p1593_p9  ;;  %p1615_p12 = scmp.lt.s32.totalorder %s1613_s8, %s1606_s5 }
  0x3d   : > { %p1610_p2 = pneg %p1609_p0  ;;  %p1616_p1 = por %p1615_p12, %p1614_p5 }
  0x3f   : > { %p1617_p3 = pnand %p1616_p1, %p1610_p2 }
  0x41   : > { %1620 = shalt.err (!%p1617_p3)
}
  0x42   : > { %s1668_s9 = smov 128   ;;  %s1669_s10 = smov 8  }
  0x43   : > { %1512 = dma.hbm_to_vmem [thread:$0]  (!%p2614_p8), %s1778_s19, 768, %s1780_s24, %s1784_s25, %s1668_s9, %s1668_s9, %s1669_s10  }
  0x44   : > { %p2615_p9 = scmp.ne.s32.totalorder %s2611_s23, 0 }
  0x46   : > { %175 = sbr.rel (%p2615_p9) target bundleno = 660 (0x294), region = 32 }
  0x4d   : > { %s177_s11 = sand.u32 1, %s1655_s13   ;;  %p2616_p13 = scmp.ne.s32.totalorder %s2610_s22, 0 }
  0x4e   : > { %s1490_s12 = smul.u32 48, %s177_s11  ;;  %s178_s18 = scalar_lea.sflag [#allocation3], %s177_s11 }
  0x50   : > { %s1815_s21 = scalar_lea.vmem [#allocation2], %s1490_s12 }
  0x51   : > { %1638 = dma.done.wait (%p2616_p13), %s178_s18, 768  }
  0x52   : > { %1640 = vsyncadd (%p2616_p13), %s178_s18, 4294966528  ;;  %p2617_p6 = scmp.eq.s32.totalorder %s1712_s16, 0 }
  0x54   : > { %1642 = dma.done.wait (%p2617_p6), [#allocation4], 16   ;;  %p2618_p8 = pmov %p2617_p6 }
  0x55   : > { %p2619_p7 = pmov %p2617_p6 }
  0x56   : > { %1644 = vsyncadd (%p2618_p8), [#allocation4], 4294967280 }
  0x57   : > { %1646 = dma.done.wait (%p2619_p7), [#allocation7], 16   ;;  %p2620_p10 = pmov %p2617_p6 }
  0x59   : > { %1648 = vsyncadd (%p2620_p10), [#allocation7], 4294967280 }
  0x5a   : > { %194 = sfence }
  0x5b   : > { %v1830_v0 = vld [vmem:[%s1815_s21] sm:$0xff]  ;;  %v1833_v1 = vld [vmem:[%s1815_s21 + $0x8] sm:$0xff]  ;;  %v343_v2 = vlaneseq  ;;  %s1670_s22 = smov 16   ;;  %v1855_v11 = vld [vmem:[%s1815_s21 + $0x18] sm:$0xff]  ;;  %vm244_vm2 = vcmask 1047680   ;;  %s1400_s23 = sld [smem:[#allocation5 + $0x1]] }
  0x5c   : > { %245 = vrot.lane.b32.xlu0 %v1830_v0, %s1670_s22  ;;  %v341_v3 = vrot.slane %v1830_v0, 1  ;;  %v342_v4 = vrot.slane %v1833_v1, 1  ;;  %v462_v6 = vrot.slane %v1830_v0, 2  ;;  %v463_v7 = vrot.slane %v1833_v1, 2  ;;  %v1858_v12 = vld [vmem:[%s1815_s21 + $0x10] sm:$0xff]  ;;  %v1896_v22 = vld [vmem:[%s1815_s21 + $0x20] sm:$0xff] }
  0x5d   : > { %v344_v5 = vshrl.u32 %v343_v2, 7  ;;  %v698_v14 = vrot.slane %v1858_v12, 1  ;;  %v699_v15 = vrot.slane %v1855_v11, 1  ;;  %v816_v17 = vrot.slane %v1858_v12, 2  ;;  %v1899_v23 = vld [vmem:[%s1815_s21 + $0x28] sm:$0xff]  ;;  %s1401_s4 = sld [smem:[#allocation5 + $0x1c]] }
  0x5e   : > { %v817_v18 = vrot.slane %v1855_v11, 2  ;;  %v1051_v24 = vrot.slane %v1896_v22, 1  ;;  %v1052_v25 = vrot.slane %v1899_v23, 1  ;;  %v1169_v27 = vrot.slane %v1896_v22, 2  ;;  %s1402_s19 = sld [smem:[#allocation5 + $0x37]]  ;;  %s1403_s24 = sld [smem:[#allocation5 + $0x2]] }
  0x5f   : > { %vm345_vm0 = vcmp.lt.s32.totalorder %v344_v5, 7  ;;  %vm464_vm1 = vcmp.lt.s32.totalorder %v344_v5, 6  ;;  %v1170_v28 = vrot.slane %v1899_v23, 2  ;;  %s1671_s25 = smov 127   ;;  %s1404_s26 = sld [smem:[#allocation5 + $0x1d]]  ;;  %vm1287_vm3 = vcmask 113664  }
  0x60   : > { %248 = vrot.lane.b32.xlu0 %v1833_v1, %s1670_s22  ;;  %v1844_v8 = vsel %vm345_vm0, %v342_v4, %v341_v3  ;;  %v1849_v9 = vsel %vm345_vm0, %v341_v3, %v342_v4  ;;  %v1852_v10 = vsel %vm464_vm1, %v463_v7, %v462_v6  ;;  %v1865_v13 = vsel %vm464_vm1, %v462_v6, %v463_v7  ;;  %s1405_s15 = sld [smem:[#allocation5 + $0x38]]  ;;  %s1429_s27 = sld [smem:[#allocation5 + $0xa]] }
  0x61   : > { %369 = vrot.lane.b32.xlu1 %v1844_v8, %s1670_s22  ;;  %v1874_v16 = vsel %vm345_vm0, %v698_v14, %v699_v15  ;;  %v1883_v19 = vsel %vm345_vm0, %v699_v15, %v698_v14  ;;  %v1886_v20 = vsel %vm464_vm1, %v817_v18, %v816_v17  ;;  %v1893_v21 = vsel %vm464_vm1, %v816_v17, %v817_v18  ;;  %s1672_s28 = smov 126   ;;  %s1430_s29 = sld [smem:[#allocation5 + $0x25]] }
  0x62   : > { %v1908_v26 = vsel %vm345_vm0, %v1052_v25, %v1051_v24  ;;  %v1917_v29 = vsel %vm345_vm0, %v1051_v24, %v1052_v25  ;;  %v1920_v30 = vsel %vm464_vm1, %v1169_v27, %v1170_v28  ;;  %v1927_v31 = vsel %vm464_vm1, %v1170_v28, %v1169_v27  ;;  %s1431_s30 = sld [smem:[#allocation5 + $0x40]]  ;;  %s1432_s5 = sld [smem:[#allocation5 + $0xb]] }
  0x63   : > { %2621 = vst [vmem:[#allocation11_spill] sm:$0xff] %v1908_v26  ;;  %2622 = vst [vmem:[#allocation12_spill] sm:$0xff] %v1920_v30  ;;  %v258_v6 = vstv %s1400_s23  ;;  %v272_v17 = vstv %s1401_s4  ;;  %s1433_s6 = sld [smem:[#allocation5 + $0x26]]  ;;  %s1434_s7 = sld [smem:[#allocation5 + $0x41]]  ;;  %vm1289_vm4 = vcmask 111616  }
  0x64   : > { %366 = vrot.lane.b32.xlu0 %v1849_v9, %s1670_s22  ;;  %2623 = vst [vmem:[#allocation13_spill] sm:$0xff] %v1927_v31  ;;  %v286_v28 = vstv %s1402_s19  ;;  %s1458_s8 = sld [smem:[#allocation5 + $0x13]]  ;;  %s1459_s9 = sld [smem:[#allocation5 + $0x2e]] }
  0x65   : > { %488 = vrot.lane.b32.xlu1 %v1852_v10, %s1670_s22  ;;  %s1460_s10 = sld [smem:[#allocation5 + $0x49]]  ;;  %s1461_s11 = sld [smem:[#allocation5 + $0x14]] }
  0x66   : > { %s1462_s12 = sld [smem:[#allocation5 + $0x2f]]  ;;  %s1463_s18 = sld [smem:[#allocation5 + $0x4a]] }
  0x67   : > { %s1410_s23 = sld [smem:[#allocation5 + $0x1f]]  ;;  %s1411_s4 = sld [smem:[#allocation5 + $0x3a]] }
  0x68   : > { %485 = vrot.lane.b32.xlu0 %v1865_v13, %s1670_s22  ;;  %s1412_s19 = sld [smem:[#allocation5 + $0x5]]  ;;  %p213_p4 = scmp.lt.s32.totalorder %s1712_s16, 1 }
  0x69   : > { %605 = vrot.lane.b32.xlu1 %v1855_v11, %s1670_s22 }
  0x6a   : > { %s2654_s16 = smov (!%p213_p4, %s1712_s16), 1 }
  0x6c   : > { %602 = vrot.lane.b32.xlu0 %v1858_v12, %s1670_s22 }
  0x6d   : > { %720 = vrot.lane.b32.xlu1 %v1874_v16, %s1670_s22 }
  0x70   : > { %723 = vrot.lane.b32.xlu0 %v1883_v19, %s1670_s22 }
  0x71   : > { %841 = vrot.lane.b32.xlu1 %v1886_v20, %s1670_s22 }
  0x74   : > { %838 = vrot.lane.b32.xlu0 %v1893_v21, %s1670_s22 }
  0x75   : > { %955 = vrot.lane.b32.xlu1 %v1896_v22, %s1670_s22 }
  0x78   : > { %958 = vrot.lane.b32.xlu0 %v1899_v23, %s1670_s22 }
  0x79   : > { %1076 = vrot.lane.b32.xlu1 %v1908_v26, %s1670_s22 }
  0x7c   : > { %1073 = vrot.lane.b32.xlu0 %v1917_v29, %s1670_s22 }
  0x7d   : > { %1191 = vrot.lane.b32.xlu1 %v1920_v30, %s1670_s22 }
  0x80   : > { %1194 = vrot.lane.b32.xlu0 %v1927_v31, %s1670_s22 }
  0xce   : > { %v246_v32 = vpop.permute.xlu0 %245 }
  0xcf   : > { %v247_v33 = vsel %vm244_vm2, %v246_v32, %v1830_v0 }
  0xd0   : > { %251 = vrot.lane.b32.xlu1 %v247_v33, %s1670_s22 }
  0xd2   : > { %v249_v34 = vpop.permute.xlu0 %248 }
  0xd3   : > { %v370_v35 = vpop.permute.xlu1 %369  ;;  %v250_v36 = vsel %vm244_vm2, %v249_v34, %v1833_v1  ;;  %v300_v34 = vstv %s1403_s24  ;;  %s1413_s24 = sld [smem:[#allocation5 + $0x20]] }
  0xd4   : > { %253 = vrot.lane.b32.xlu1 %v250_v36, %s1670_s22  ;;  %v371_v52 = vsel %vm244_vm2, %v370_v35, %v1844_v8 }
  0xd6   : > { %v367_v37 = vpop.permute.xlu0 %366 }
  0xd7   : > { %v489_v38 = vpop.permute.xlu1 %488  ;;  %v368_v53 = vsel %vm244_vm2, %v367_v37, %v1849_v9  ;;  %v314_v37 = vstv %s1404_s26  ;;  %s1414_s26 = sld [smem:[#allocation5 + $0x3b]] }
  0xd8   : > { %v490_v54 = vsel %vm244_vm2, %v489_v38, %v1852_v10 }
  0xda   : > { %v486_v39 = vpop.permute.xlu0 %485 }
  0xdb   : > { %v606_v40 = vpop.permute.xlu1 %605  ;;  %v487_v56 = vsel %vm244_vm2, %v486_v39, %v1865_v13 }
  0xdc   : > { %v607_v41 = vsel %vm244_vm2, %v606_v40, %v1855_v11 }
  0xdd   : > { %610 = vrot.lane.b32.xlu1 %v607_v41, %s1670_s22  ;;  %v328_v41 = vstv %s1405_s15  ;;  %s1418_s15 = sld [smem:[#allocation5 + $0x7]] }
  0xde   : > { %v603_v42 = vpop.permute.xlu0 %602 }
  0xdf   : > { %v721_v43 = vpop.permute.xlu1 %720  ;;  %v604_v44 = vsel %vm244_vm2, %v603_v42, %v1858_v12 }
  0xe0   : > { %608 = vrot.lane.b32.xlu0 %v604_v44, %s1670_s22  ;;  %v722_v55 = vsel %vm244_vm2, %v721_v43, %v1874_v16  ;;  %v615_v43 = vstv %s1429_s27  ;;  %s1419_s27 = sld [smem:[#allocation5 + $0x22]] }
  0xe2   : > { %v724_v45 = vpop.permute.xlu0 %723 }
  0xe3   : > { %v842_v46 = vpop.permute.xlu1 %841  ;;  %v725_v57 = vsel %vm244_vm2, %v724_v45, %v1883_v19 }
  0xe4   : > { %v843_v59 = vsel %vm244_vm2, %v842_v46, %v1886_v20 }
  0xe6   : > { %v839_v47 = vpop.permute.xlu0 %838 }
  0xe7   : > { %v956_v48 = vpop.permute.xlu1 %955  ;;  %v840_v61 = vsel %vm244_vm2, %v839_v47, %v1893_v21 }
  0xe8   : > { %v957_v49 = vsel %vm244_vm2, %v956_v48, %v1896_v22 }
  0xe9   : > { %961 = vrot.lane.b32.xlu1 %v957_v49, %s1670_s22  ;;  %v629_v49 = vstv %s1430_s29  ;;  %s1420_s29 = sld [smem:[#allocation5 + $0x3d]] }
  0xea   : > { %v959_v50 = vpop.permute.xlu0 %958 }
  0xeb   : > { %v960_v51 = vsel %vm244_vm2, %v959_v50, %v1899_v23  ;;  %v1077_v58 = vpop.permute.xlu1 %1076 }
  0xec   : > { %963 = vrot.lane.b32.xlu0 %v960_v51, %s1670_s22  ;;  %v1078_v62 = vsel %vm244_vm2, %v1077_v58, %v1908_v26 }
  0xed   : > { %374 = vrot.lane.b32.xlu1 %v371_v52, %s1670_s22  ;;  %v643_v52 = vstv %s1431_s30  ;;  %s1421_s30 = sld [smem:[#allocation5 + $0x8]] }
  0xee   : > { %v1074_v60 = vpop.permute.xlu0 %1073 }
  0xef   : > { %v1192_v63 = vpop.permute.xlu1 %1191  ;;  %v1075_v2 = vsel %vm244_vm2, %v1074_v60, %v1917_v29  ;;  %v685_v60 = vstv %s1434_s7  ;;  %s2064_s7 = sld [smem:[#allocation5 + $0xd]] }
  0xf0   : > { %372 = vrot.lane.b32.xlu0 %v368_v53, %s1670_s22  ;;  %v1193_v3 = vsel %vm244_vm2, %v1192_v63, %v1920_v30  ;;  %v968_v63 = vstv %s1458_s8  ;;  %s2072_s8 = sld [smem:[#allocation5 + $0x28]] }
  0xf1   : > { %493 = vrot.lane.b32.xlu1 %v490_v54, %s1670_s22 }
  0xf2   : > { %v1195_v4 = vpop.permute.xlu0 %1194 }
  0xf3   : > { %v1196_v5 = vsel %vm244_vm2, %v1195_v4, %v1927_v31 }
  0xf4   : > { %491 = vrot.lane.b32.xlu0 %v487_v56, %s1670_s22 }
  0xf5   : > { %726 = vrot.lane.b32.xlu1 %v722_v55, %s1670_s22  ;;  %v657_v55 = vstv %s1432_s5  ;;  %s1422_s5 = sld [smem:[#allocation5 + $0x23]] }
  0xf8   : > { %728 = vrot.lane.b32.xlu0 %v725_v57, %s1670_s22  ;;  %v671_v57 = vstv %s1433_s6  ;;  %s1423_s6 = sld [smem:[#allocation5 + $0x3e]] }
  0xf9   : > { %846 = vrot.lane.b32.xlu1 %v843_v59, %s1670_s22 }
  0xfc   : > { %844 = vrot.lane.b32.xlu0 %v840_v61, %s1670_s22 }
  0xfd   : > { %1081 = vrot.lane.b32.xlu1 %v1078_v62, %s1670_s22 }
 0x100   : > { %1079 = vrot.lane.b32.xlu0 %v1075_v2, %s1670_s22 }
 0x101   : > { %1197 = vrot.lane.b32.xlu1 %v1193_v3, %s1670_s22 }
 0x104   : > { %1199 = vrot.lane.b32.xlu0 %v1196_v5, %s1670_s22  ;;  %s1409_s22 = sld [smem:[#allocation5 + $0x4]] }
 0x142   : > { %v252_v7 = vpop.permute.xlu1 %251 }
 0x143   : > { %v255_v14 = vsel %vm244_vm2, %v252_v7, %v1830_v0  ;;  %v982_v7 = vstv %s1459_s9  ;;  %s2083_s9 = sld [smem:[#allocation5 + $0x43]] }
 0x144   : > { %v259_v15 = vmul.f32 %v258_v6, %v255_v14  ;;  %v273_v27 = vmul.f32 %v272_v17, %v255_v14  ;;  %v287_v33 = vmul.f32 %v286_v28, %v255_v14  ;;  %v301_v36 = vmul.f32 %v300_v34, %v255_v14 }
 0x145   : > { %v315_v39 = vmul.f32 %v314_v37, %v255_v14  ;;  %v329_v45 = vmul.f32 %v328_v41, %v255_v14 }
 0x146   : > { %v254_v18 = vpop.permute.xlu1 %253  ;;  %263 = vrot.lane.b32.xlu0 %v259_v15, %s1671_s25 }
 0x147   : > { %v256_v24 = vsel %vm244_vm2, %v254_v18, %v1833_v1 }
 0x148   : > { %v260_v25 = vmul.f32 %v258_v6, %v256_v24  ;;  %v274_v32 = vmul.f32 %v272_v17, %v256_v24  ;;  %v288_v35 = vmul.f32 %v286_v28, %v256_v24  ;;  %v302_v38 = vmul.f32 %v300_v34, %v256_v24 }
 0x149   : > { %v316_v44 = vmul.f32 %v314_v37, %v256_v24  ;;  %v330_v50 = vmul.f32 %v328_v41, %v256_v24  ;;  %v996_v17 = vstv %s1460_s10  ;;  %v1024_v28 = vstv %s1462_s12  ;;  %s1441_s10 = sld [smem:[#allocation5 + $0xe]]  ;;  %s1443_s12 = sld [smem:[#allocation5 + $0x44]] }
 0x14a   : > { %265 = vrot.lane.b32.xlu1 %v260_v25, %s1671_s25  ;;  %277 = vrot.lane.b32.xlu0 %v273_v27, %s1671_s25  ;;  %v1010_v25 = vstv %s1461_s11  ;;  %v1038_v34 = vstv %s1463_s18  ;;  %s1442_s11 = sld [smem:[#allocation5 + $0x29]]  ;;  %s2113_s18 = sld [smem:[#allocation5 + $0x10]] }
 0x14e   : > { %279 = vrot.lane.b32.xlu1 %v274_v32, %s1671_s25  ;;  %291 = vrot.lane.b32.xlu0 %v287_v33, %s1671_s25 }
 0x14f   : > { %v611_v46 = vpop.permute.xlu1 %610 }
 0x150   : > { %v613_v48 = vsel %vm244_vm2, %v611_v46, %v1855_v11 }
 0x151   : > { %v631_v53 = vmul.f32 %v629_v49, %v613_v48  ;;  %v645_v11 = vmul.f32 %v643_v52, %v613_v48  ;;  %v659_v58 = vmul.f32 %v657_v55, %v613_v48  ;;  %v673_v2 = vmul.f32 %v671_v57, %v613_v48 }
 0x152   : > { %293 = vrot.lane.b32.xlu1 %v288_v35, %s1671_s25  ;;  %305 = vrot.lane.b32.xlu0 %v301_v36, %s1672_s28  ;;  %v609_v40 = vpop.permute.xlu0 %608  ;;  %v687_v14 = vmul.f32 %v685_v60, %v613_v48 }
 0x153   : > { %v612_v42 = vsel %vm244_vm2, %v609_v40, %v1858_v12  ;;  %v617_v12 = vmul.f32 %v615_v43, %v613_v48  ;;  %v379_v40 = vstv %s1409_s22  ;;  %s2121_s22 = sld [smem:[#allocation5 + $0x2b]] }
 0x154   : > { %v616_v47 = vmul.f32 %v615_v43, %v612_v42  ;;  %v630_v51 = vmul.f32 %v629_v49, %v612_v42  ;;  %v644_v54 = vmul.f32 %v643_v52, %v612_v42  ;;  %v658_v56 = vmul.f32 %v657_v55, %v612_v42 }
 0x155   : > { %v672_v59 = vmul.f32 %v671_v57, %v612_v42  ;;  %v686_v3 = vmul.f32 %v685_v60, %v612_v42  ;;  %v435_v52 = vstv %s1413_s24  ;;  %s1452_s24 = sld [smem:[#allocation5 + $0x47]] }
 0x156   : > { %307 = vrot.lane.b32.xlu1 %v302_v38, %s1672_s28  ;;  %319 = vrot.lane.b32.xlu0 %v315_v39, %s1672_s28 }
 0x15a   : > { %321 = vrot.lane.b32.xlu1 %v316_v44, %s1672_s28  ;;  %333 = vrot.lane.b32.xlu0 %v329_v45, %s1672_s28  ;;  %v393_v44 = vstv %s1410_s23  ;;  %s1449_s23 = sld [smem:[#allocation5 + $0x46]] }
 0x15b   : > { %v962_v61 = vpop.permute.xlu1 %961 }
 0x15c   : > { %v965_v62 = vsel %vm244_vm2, %v962_v61, %v1896_v22  ;;  %v498_v61 = vstv %s1418_s15  ;;  %s2171_s15 = sld [smem:[#allocation5 + $0x31]] }
 0x15d   : > { %v969_v5 = vmul.f32 %v968_v63, %v965_v62  ;;  %v983_v22 = vmul.f32 %v982_v7, %v965_v62  ;;  %v997_v18 = vmul.f32 %v996_v17, %v965_v62  ;;  %v1025_v32 = vmul.f32 %v1024_v28, %v965_v62 }
 0x15e   : > { %335 = vrot.lane.b32.xlu1 %v330_v50, %s1672_s28  ;;  %620 = vrot.lane.b32.xlu0 %v616_v47, %s1671_s25  ;;  %v964_v4 = vpop.permute.xlu0 %963  ;;  %v1039_v36 = vmul.f32 %v1038_v34, %v965_v62  ;;  %v407_v47 = vstv %s1411_s4  ;;  %v421_v50 = vstv %s1412_s19  ;;  %s1450_s4 = sld [smem:[#allocation5 + $0x11]]  ;;  %s1451_s19 = sld [smem:[#allocation5 + $0x2c]] }
 0x15f   : > { %v966_v6 = vsel %vm244_vm2, %v964_v4, %v1899_v23  ;;  %v1011_v23 = vmul.f32 %v1010_v25, %v965_v62  ;;  %v375_v39 = vpop.permute.xlu1 %374 }
 0x160   : > { %v970_v15 = vmul.f32 %v968_v63, %v966_v6  ;;  %v984_v24 = vmul.f32 %v982_v7, %v966_v6  ;;  %v998_v27 = vmul.f32 %v996_v17, %v966_v6  ;;  %v1012_v33 = vmul.f32 %v1010_v25, %v966_v6 }
 0x161   : > { %v1026_v37 = vmul.f32 %v1024_v28, %v966_v6  ;;  %v1040_v41 = vmul.f32 %v1038_v34, %v966_v6  ;;  %v377_v43 = vsel %vm244_vm2, %v375_v39, %v1844_v8 }
 0x162   : > { %622 = vrot.lane.b32.xlu1 %v617_v12, %s1671_s25  ;;  %634 = vrot.lane.b32.xlu0 %v630_v51, %s1671_s25  ;;  %v373_v35 = vpop.permute.xlu0 %372  ;;  %v381_v45 = vmul.f32 %v379_v40, %v377_v43  ;;  %v395_v48 = vmul.f32 %v393_v44, %v377_v43  ;;  %v409_v12 = vmul.f32 %v407_v47, %v377_v43 }
 0x163   : > { %v376_v38 = vsel %vm244_vm2, %v373_v35, %v1849_v9  ;;  %v568_v35 = vstv %s1423_s6  ;;  %s2212_s6 = sld [smem:[#allocation6 + $0x2]] }
 0x164   : > { %v380_v42 = vmul.f32 %v379_v40, %v376_v38  ;;  %v394_v46 = vmul.f32 %v393_v44, %v376_v38  ;;  %v408_v49 = vmul.f32 %v407_v47, %v376_v38  ;;  %v422_v51 = vmul.f32 %v421_v50, %v376_v38 }
 0x165   : > { %v747_v47 = vstv %s2072_s8  ;;  %s2219_s8 = sld [smem:[#allocation6]] }
 0x166   : > { %636 = vrot.lane.b32.xlu1 %v631_v53, %s1671_s25  ;;  %648 = vrot.lane.b32.xlu0 %v644_v54, %s1671_s25  ;;  %v423_v53 = vmul.f32 %v421_v50, %v377_v43  ;;  %v436_v54 = vmul.f32 %v435_v52, %v376_v38  ;;  %v492_v55 = vpop.permute.xlu0 %491 }
 0x16a   : > { %650 = vrot.lane.b32.xlu1 %v645_v11, %s1671_s25  ;;  %662 = vrot.lane.b32.xlu0 %v658_v56, %s1672_s28  ;;  %v449_v11 = vstv %s1414_s26  ;;  %v437_v56 = vmul.f32 %v435_v52, %v377_v43  ;;  %v729_v60 = vpop.permute.xlu0 %728  ;;  %s2163_s26 = sld [smem:[#allocation5 + $0x16]] }
 0x16b   : > { %v450_v57 = vmul.f32 %v449_v11, %v376_v38  ;;  %v451_v62 = vmul.f32 %v449_v11, %v377_v43  ;;  %v775_v11 = vstv %s1441_s10  ;;  %s2233_s10 = sld [smem:[#allocation5 + $0x4d]] }
 0x16e   : > { %664 = vrot.lane.b32.xlu1 %v659_v58, %s1672_s28  ;;  %676 = vrot.lane.b32.xlu0 %v672_v59, %s1672_s28  ;;  %v495_v58 = vsel %vm244_vm2, %v492_v55, %v1865_v13  ;;  %v494_v59 = vpop.permute.xlu1 %493 }
 0x16f   : > { %v499_v63 = vmul.f32 %v498_v61, %v495_v58  ;;  %v569_v39 = vmul.f32 %v568_v35, %v495_v58 }
 0x172   : > { %678 = vrot.lane.b32.xlu1 %v673_v2, %s1672_s28  ;;  %690 = vrot.lane.b32.xlu0 %v686_v3, %s1672_s28  ;;  %v496_v2 = vsel %vm244_vm2, %v494_v59, %v1852_v10  ;;  %v512_v3 = vstv %s1419_s27  ;;  %v727_v4 = vpop.permute.xlu1 %726  ;;  %s2185_s27 = sld [smem:[#allocation5 + $0x4c]] }
 0x173   : > { %v500_v6 = vmul.f32 %v498_v61, %v496_v2  ;;  %v513_v7 = vmul.f32 %v512_v3, %v495_v58  ;;  %v730_v40 = vsel %vm244_vm2, %v727_v4, %v1874_v16  ;;  %v570_v44 = vmul.f32 %v568_v35, %v496_v2 }
 0x174   : > { %v748_v50 = vmul.f32 %v747_v47, %v730_v40 }
 0x176   : > { %692 = vrot.lane.b32.xlu1 %v687_v14, %s1672_s28  ;;  %973 = vrot.lane.b32.xlu0 %v969_v5, %s1671_s25  ;;  %v2054_v5 = vpop.permute.xlu0 %844  ;;  %v526_v14 = vstv %s1420_s29  ;;  %s2197_s29 = sld [smem:[#allocation5 + $0x36]] }
 0x177   : > { %v528_v25 = vmul.f32 %v526_v14, %v496_v2 }
 0x17a   : > { %987 = vrot.lane.b32.xlu0 %v983_v22, %s1671_s25  ;;  %975 = vrot.lane.b32.xlu1 %v970_v15, %s1671_s25  ;;  %v514_v22 = vmul.f32 %v512_v3, %v496_v2  ;;  %v527_v15 = vmul.f32 %v526_v14, %v495_v58  ;;  %v2058_v17 = vpop.permute.xlu0 %1079  ;;  %v803_v3 = vstv %s1443_s12  ;;  %s2244_s12 = sld [smem:[#allocation5 + $0x39]] }
 0x17e   : > { %1001 = vrot.lane.b32.xlu0 %v997_v18, %s1671_s25  ;;  %989 = vrot.lane.b32.xlu1 %v984_v24, %s1671_s25  ;;  %v2060_v18 = vpop.permute.xlu1 %846  ;;  %v540_v24 = vstv %s1421_s30  ;;  %v2070_v28 = vpop.permute.xlu0 %1199  ;;  %s2202_s30 = sld [smem:[#allocation5 + $0x17]] }
 0x182   : > { %1015 = vrot.lane.b32.xlu0 %v1011_v23, %s1672_s28  ;;  %1003 = vrot.lane.b32.xlu1 %v998_v27, %s1671_s25  ;;  %v541_v23 = vmul.f32 %v540_v24, %v495_v58  ;;  %v2066_v27 = vpop.permute.xlu1 %1081 }
 0x186   : > { %1029 = vrot.lane.b32.xlu0 %v1025_v32, %s1672_s28  ;;  %1017 = vrot.lane.b32.xlu1 %v1012_v33, %s1672_s28  ;;  %v554_v32 = vstv %s1422_s5  ;;  %v542_v33 = vmul.f32 %v540_v24, %v496_v2  ;;  %s2204_s5 = sld [smem:[#allocation5]] }
 0x187   : > { %v555_v34 = vmul.f32 %v554_v32, %v495_v58  ;;  %v556_v38 = vmul.f32 %v554_v32, %v496_v2  ;;  %v776_v58 = vmul.f32 %v775_v11, %v730_v40 }
 0x18a   : > { %1043 = vrot.lane.b32.xlu0 %v1039_v36, %s1672_s28  ;;  %1031 = vrot.lane.b32.xlu1 %v1026_v37, %s1672_s28  ;;  %v2076_v36 = vpop.permute.xlu1 %1197 }
 0x18e   : > { %1045 = vrot.lane.b32.xlu1 %v1040_v41, %s1672_s28  ;;  %384 = vrot.lane.b32.xlu0 %v380_v42, %s1671_s25  ;;  %v733_v41 = vstv %s2064_s7  ;;  %s2217_s7 = sld [smem:[#allocation5 + $0x32]] }
 0x192   : > { %386 = vrot.lane.b32.xlu1 %v381_v45, %s1671_s25  ;;  %398 = vrot.lane.b32.xlu0 %v394_v46, %s1671_s25  ;;  %v734_v45 = vmul.f32 %v733_v41, %v730_v40  ;;  %v731_v46 = vsel %vm244_vm2, %v729_v60, %v1883_v19  ;;  %v789_v60 = vstv %s1442_s11  ;;  %s2236_s11 = sld [smem:[#allocation6 + $0x1]] }
 0x193   : > { %v749_v55 = vmul.f32 %v747_v47, %v731_v46  ;;  %v777_v2 = vmul.f32 %v775_v11, %v731_v46  ;;  %v791_v14 = vmul.f32 %v789_v60, %v731_v46 }
 0x196   : > { %400 = vrot.lane.b32.xlu1 %v395_v48, %s1671_s25  ;;  %412 = vrot.lane.b32.xlu0 %v408_v49, %s1671_s25 }
 0x19a   : > { %414 = vrot.lane.b32.xlu1 %v409_v12, %s1671_s25  ;;  %426 = vrot.lane.b32.xlu0 %v422_v51, %s1672_s28  ;;  %v735_v12 = vmul.f32 %v733_v41, %v731_v46  ;;  %v761_v51 = vstv %s2083_s9  ;;  %s2221_s9 = sld [smem:[#allocation5 + $0x1b]] }
 0x19b   : > { %v763_v59 = vmul.f32 %v761_v51, %v731_v46 }
 0x19e   : > { %428 = vrot.lane.b32.xlu1 %v423_v53, %s1672_s28  ;;  %440 = vrot.lane.b32.xlu0 %v436_v54, %s1672_s28  ;;  %v762_v54 = vmul.f32 %v761_v51, %v730_v40 }
 0x1a2   : > { %442 = vrot.lane.b32.xlu1 %v437_v56, %s1672_s28  ;;  %454 = vrot.lane.b32.xlu0 %v450_v57, %s1672_s28 }
 0x1a6   : > { %456 = vrot.lane.b32.xlu1 %v451_v62, %s1672_s28  ;;  %503 = vrot.lane.b32.xlu0 %v499_v63, %s1671_s25  ;;  %v790_v63 = vmul.f32 %v789_v60, %v730_v40  ;;  %v921_v60 = vstv %s1452_s24  ;;  %s2296_s24 = sld [smem:[#allocation5 + $0x1a]] }
 0x1aa   : > { %505 = vrot.lane.b32.xlu1 %v500_v6, %s1671_s25  ;;  %517 = vrot.lane.b32.xlu0 %v513_v7, %s1671_s25  ;;  %v804_v7 = vmul.f32 %v803_v3, %v730_v40  ;;  %v879_v40 = vstv %s1449_s23  ;;  %s2264_s23 = sld [smem:[#allocation5 + $0x34]] }
 0x1ae   : > { %519 = vrot.lane.b32.xlu1 %v514_v22, %s1671_s25  ;;  %531 = vrot.lane.b32.xlu0 %v527_v15, %s1671_s25  ;;  %v848_v22 = vsel %vm244_vm2, %v2054_v5, %v1893_v21  ;;  %v851_v15 = vstv %s2113_s18  ;;  %s2247_s18 = sld [smem:[#allocation5 + $0x19]] }
 0x1af   : > { %v852_v32 = vmul.f32 %v851_v15, %v848_v22 }
 0x1b2   : > { %533 = vrot.lane.b32.xlu1 %v528_v25, %s1671_s25  ;;  %545 = vrot.lane.b32.xlu0 %v541_v23, %s1672_s28  ;;  %v805_v23 = vmul.f32 %v803_v3, %v731_v46  ;;  %v893_v46 = vstv %s1450_s4  ;;  %s2270_s4 = sld [smem:[#allocation5 + $0x1e]] }
 0x1b3   : > { %v894_v51 = vmul.f32 %v893_v46, %v848_v22 }
 0x1b6   : > { %547 = vrot.lane.b32.xlu1 %v542_v33, %s1672_s28  ;;  %559 = vrot.lane.b32.xlu0 %v555_v34, %s1672_s28  ;;  %v849_v33 = vsel %vm244_vm2, %v2060_v18, %v1886_v20  ;;  %v865_v34 = vstv %s2121_s22  ;;  %s2252_s22 = sld [smem:[#allocation5 + $0x3]] }
 0x1b8   : > { %v2078_v37 = vpop.permute.xlu0 %263 }
 0x1ba   : > { %561 = vrot.lane.b32.xlu1 %v556_v38, %s1672_s28  ;;  %573 = vrot.lane.b32.xlu0 %v569_v39, %s1672_s28  ;;  %v853_v38 = vmul.f32 %v851_v15, %v849_v33  ;;  %v866_v39 = vmul.f32 %v865_v34, %v848_v22  ;;  %v1086_v15 = vstv %s2163_s26  ;;  %s2321_s26 = sld [smem:[#allocation5 + $0x6]] }
 0x1bc   : > { %v2087_v42 = vpop.permute.xlu1 %265  ;;  %v2089_v43 = vpop.permute.xlu0 %277 }
 0x1be   : > { %575 = vrot.lane.b32.xlu1 %v570_v44, %s1672_s28  ;;  %738 = vrot.lane.b32.xlu0 %v734_v45, %s1671_s25  ;;  %v867_v44 = vmul.f32 %v865_v34, %v849_v33  ;;  %v880_v45 = vmul.f32 %v879_v40, %v848_v22  ;;  %v923_v34 = vmul.f32 %v921_v60, %v849_v33 }
 0x1c0   : > { %v2096_v48 = vpop.permute.xlu1 %279  ;;  %v2098_v49 = vpop.permute.xlu0 %291 }
 0x1c2   : > { %752 = vrot.lane.b32.xlu0 %v748_v50, %s1671_s25  ;;  %740 = vrot.lane.b32.xlu1 %v735_v12, %s1671_s25  ;;  %v881_v12 = vmul.f32 %v879_v40, %v849_v33 }
 0x1c4   : > { %v2103_v52 = vpop.permute.xlu1 %293  ;;  %v2105_v53 = vpop.permute.xlu0 %305 }
 0x1c6   : > { %766 = vrot.lane.b32.xlu0 %v762_v54, %s1671_s25  ;;  %754 = vrot.lane.b32.xlu1 %v749_v55, %s1671_s25  ;;  %v907_v54 = vstv %s1451_s19  ;;  %s2272_s19 = sld [smem:[#allocation5 + $0x4f]] }
 0x1c7   : > { %v909_v3 = vmul.f32 %v907_v54, %v849_v33 }
 0x1c8   : > { %v2109_v56 = vpop.permute.xlu1 %307  ;;  %v2111_v57 = vpop.permute.xlu0 %319 }
 0x1ca   : > { %780 = vrot.lane.b32.xlu0 %v776_v58, %s1672_s28  ;;  %768 = vrot.lane.b32.xlu1 %v763_v59, %s1671_s25  ;;  %v895_v58 = vmul.f32 %v893_v46, %v849_v33  ;;  %v908_v59 = vmul.f32 %v907_v54, %v848_v22  ;;  %v237_v54 = vstv %s2197_s29  ;;  %s2337_s29 = sld [smem:[#allocation5 + $0x50]] }
 0x1cc   : > { %v2117_v61 = vpop.permute.xlu1 %321  ;;  %v2119_v62 = vpop.permute.xlu0 %333 }
 0x1ce   : > { %794 = vrot.lane.b32.xlu0 %v790_v63, %s1672_s28  ;;  %782 = vrot.lane.b32.xlu1 %v777_v2, %s1672_s28 }
 0x1d0   : > { %v2125_v4 = vpop.permute.xlu1 %335  ;;  %v2127_v6 = vpop.permute.xlu0 %620 }
 0x1d2   : > { %808 = vrot.lane.b32.xlu0 %v804_v7, %s1672_s28  ;;  %796 = vrot.lane.b32.xlu1 %v791_v14, %s1672_s28  ;;  %v922_v7 = vmul.f32 %v921_v60, %v848_v22  ;;  %v2180_v14 = vsel %vm244_vm2, %v2058_v17, %v1917_v29  ;;  %v2195_v17 = vsel %vm244_vm2, %v2066_v27, %v1908_v26 }
 0x1d3   : > { %v1087_v22 = vmul.f32 %v1086_v15, %v2180_v14  ;;  %v1088_v40 = vmul.f32 %v1086_v15, %v2195_v17 }
 0x1d4   : > { %v2135_v24 = vpop.permute.xlu1 %622  ;;  %v2137_v25 = vpop.permute.xlu0 %634 }
 0x1d6   : > { %810 = vrot.lane.b32.xlu1 %v805_v23, %s1672_s28  ;;  %856 = vrot.lane.b32.xlu0 %v852_v32, %s1671_s25 }
 0x1d8   : > { %v2145_v5 = vpop.permute.xlu1 %636  ;;  %v2147_v35 = vpop.permute.xlu0 %648 }
 0x1da   : > { %858 = vrot.lane.b32.xlu1 %v853_v38, %s1671_s25  ;;  %870 = vrot.lane.b32.xlu0 %v866_v39, %s1671_s25  ;;  %v1100_v38 = vstv %s2171_s15  ;;  %s2325_s15 = sld [smem:[#allocation5 + $0x35]] }
 0x1db   : > { %v1101_v27 = vmul.f32 %v1100_v38, %v2180_v14 }
 0x1dc   : > { %v2151_v41 = vpop.permute.xlu1 %650  ;;  %v2153_v18 = vpop.permute.xlu0 %662 }
 0x1de   : > { %872 = vrot.lane.b32.xlu1 %v867_v44, %s1671_s25  ;;  %884 = vrot.lane.b32.xlu0 %v880_v45, %s1671_s25  ;;  %v1114_v44 = vstv %s2185_s27  ;;  %s2334_s27 = sld [smem:[#allocation5 + $0x21]] }
 0x1e0   : > { %v2157_v47 = vpop.permute.xlu1 %664  ;;  %v2159_v50 = vpop.permute.xlu0 %676 }
 0x1e2   : > { %886 = vrot.lane.b32.xlu1 %v881_v12, %s1671_s25  ;;  %898 = vrot.lane.b32.xlu0 %v894_v51, %s1672_s28  ;;  %v1102_v12 = vmul.f32 %v1100_v38, %v2195_v17  ;;  %v1115_v51 = vmul.f32 %v1114_v44, %v2180_v14 }
 0x1e4   : > { %v2165_v55 = vpop.permute.xlu1 %678  ;;  %v2167_v11 = vpop.permute.xlu0 %690 }
 0x1e6   : > { %900 = vrot.lane.b32.xlu1 %v895_v58, %s1672_s28  ;;  %912 = vrot.lane.b32.xlu0 %v908_v59, %s1672_s28  ;;  %v1128_v58 = vstv %s2202_s30  ;;  %v221_v59 = vstv %s2204_s5  ;;  %s2344_s30 = sld [smem:[#allocation5 + $0x3c]]  ;;  %s2394_s5 = sld [smem:[#allocation5 + $0x3f]] }
 0x1e7   : > { %v1129_v15 = vmul.f32 %v1128_v58, %v2180_v14  ;;  %v222_v38 = vmul.f32 %v221_v59, %v1830_v0 }
 0x1e8   : > { %v2173_v63 = vpop.permute.xlu1 %692  ;;  %v2175_v2 = vpop.permute.xlu0 %973 }
 0x1ea   : > { %914 = vrot.lane.b32.xlu1 %v909_v3, %s1672_s28  ;;  %926 = vrot.lane.b32.xlu0 %v922_v7, %s1672_s28  ;;  %v1116_v7 = vmul.f32 %v1114_v44, %v2195_v17  ;;  %v229_v44 = vstv %s2221_s9  ;;  %s2414_s9 = sld [smem:[#allocation5 + $0xf]] }
 0x1ec   : > { %v2187_v23 = vpop.permute.xlu1 %975  ;;  %v2189_v32 = vpop.permute.xlu0 %987 }
 0x1ed   : > { %2624 = vst [vmem:[#allocation14_spill] sm:$0xff] %v2187_v23  ;;  %2625 = vst [vmem:[#allocation15_spill] sm:$0xff] %v2189_v32  ;;  %v231_v32 = vmul.f32 %v229_v44, %v1833_v1 }
 0x1ee   : > { %928 = vrot.lane.b32.xlu1 %v923_v34, %s1672_s28  ;;  %1091 = vrot.lane.b32.xlu0 %v1087_v22, %s1671_s25  ;;  %v238_v34 = vmul.f32 %v237_v54, %v1830_v0  ;;  %v241_v22 = vstv %s2212_s6  ;;  %s2396_s6 = sld [smem:[#allocation5 + $0xc]] }
 0x1f0   : > { %v2206_v33 = vpop.permute.xlu1 %989  ;;  %v2208_v39 = vpop.permute.xlu0 %1001 }
 0x1f1   : > { %2626 = vst [vmem:[#allocation16_spill] sm:$0xff] %v2206_v33  ;;  %2627 = vst [vmem:[#allocation17_spill] sm:$0xff] %v2208_v39  ;;  %v233_v39 = vstv %s2236_s11  ;;  %v361_v33 = vstv %s2244_s12  ;;  %s2437_s11 = sld [smem:[#allocation5 + $0x45]]  ;;  %s2439_s12 = sld [smem:[#allocation5 + $0x12]] }
 0x1f2   : > { %1093 = vrot.lane.b32.xlu1 %v1088_v40, %s1671_s25  ;;  %1105 = vrot.lane.b32.xlu0 %v1101_v27, %s1671_s25  ;;  %v1142_v40 = vstv %s2217_s7  ;;  %v225_v27 = vstv %s2219_s8  ;;  %s2404_s7 = sld [smem:[#allocation5 + $0x27]]  ;;  %s2412_s8 = sld [smem:[#allocation5 + $0x42]] }
 0x1f4   : > { %v2223_v45 = vpop.permute.xlu1 %1003  ;;  %v2225_v46 = vpop.permute.xlu0 %1015 }
 0x1f5   : > { %2628 = vst [vmem:[#allocation18_spill] sm:$0xff] %v2223_v45  ;;  %2629 = vst [vmem:[#allocation19_spill] sm:$0xff] %v2225_v46  ;;  %v1130_v45 = vmul.f32 %v1128_v58, %v2195_v17  ;;  %v226_v58 = vadd.f32 %v225_v27, %v222_v38 }
 0x1f6   : > { %1107 = vrot.lane.b32.xlu1 %v1102_v12, %s1671_s25  ;;  %1119 = vrot.lane.b32.xlu0 %v1115_v51, %s1671_s25 }
 0x1f8   : > { %v2238_v60 = vpop.permute.xlu1 %1017  ;;  %v2240_v3 = vpop.permute.xlu0 %1029 }
 0x1f9   : > { %2630 = vst [vmem:[#allocation20_spill] sm:$0xff] %v2238_v60  ;;  %2631 = vst [vmem:[#allocation21_spill] sm:$0xff] %v2240_v3  ;;  %v1143_v3 = vmul.f32 %v1142_v40, %v2180_v14  ;;  %v223_v60 = vmul.f32 %v221_v59, %v1833_v1  ;;  %v1144_v59 = vmul.f32 %v1142_v40, %v2195_v17 }
 0x1fa   : > { %1121 = vrot.lane.b32.xlu1 %v1116_v7, %s1671_s25  ;;  %1133 = vrot.lane.b32.xlu0 %v1129_v15, %s1672_s28  ;;  %v242_v7 = vadd.f32 %v241_v22, %v238_v34  ;;  %v239_v15 = vmul.f32 %v237_v54, %v1833_v1 }
 0x1fb   : > { %v227_v46 = vadd.f32 %v225_v27, %v223_v60  ;;  %v1218_v27 = vstv %s2264_s23  ;;  %s2484_s23 = sld [smem:[#allocation5 + $0x15]] }
 0x1fc   : > { %v2258_v12 = vpop.permute.xlu1 %1031  ;;  %v2260_v51 = vpop.permute.xlu0 %1043  ;;  %v297_v26 = vadd.f32 %v2098_v49, %v242_v7  ;;  %v243_v38 = vadd.f32 %v241_v22, %v239_v15  ;;  %v235_v7 = vadd.f32 %v233_v39, %v231_v32  ;;  %v355_v15 = vstv %s2270_s4  ;;  %s2502_s4 = sld [smem:[#allocation5 + $0x30]] }
 0x1fd   : > { %2632 = vst [vmem:[#allocation22_spill] sm:$0xff] %v2258_v12  ;;  %2633 = vst [vmem:[#allocation23_spill] sm:$0xff] %v2260_v51  ;;  %v230_v51 = vmul.f32 %v229_v44, %v1830_v0  ;;  %v1156_v12 = vstv %s2233_s10  ;;  %v1204_v0 = vstv %s2247_s18  ;;  %s2423_s10 = sld [smem:[#allocation5 + $0x2a]]  ;;  %s2455_s18 = sld [smem:[#allocation5 + $0x2d]] }
 0x1fe   : > { %1135 = vrot.lane.b32.xlu1 %v1130_v45, %s1672_s28  ;;  %1147 = vrot.lane.b32.xlu0 %v1143_v3, %s1672_s28  ;;  %v1157_v45 = vmul.f32 %v1156_v12, %v2180_v14  ;;  %v2285_v3 = vsel %vm244_vm2, %v2076_v36, %v1920_v30  ;;  %v269_v14 = vadd.f32 %v2078_v37, %v226_v58 }
 0x1ff   : > { %v234_v40 = vadd.f32 %v233_v39, %v230_v51  ;;  %v339_v36 = vadd.f32 %v2119_v62, %v297_v26  ;;  %v362_v30 = vmul.f32 %v361_v33, %v1849_v9  ;;  %v1158_v1 = vmul.f32 %v1156_v12, %v2195_v17 }
 0x200   : > { %v2277_v34 = vpop.permute.xlu1 %1045  ;;  %v385_v54 = vpop.permute.xlu0 %384  ;;  %v1205_v22 = vmul.f32 %v1204_v0, %v2285_v3  ;;  %v2304_v37 = vsel %vm244_vm2, %v2070_v28, %v1927_v31  ;;  %v298_v44 = vadd.f32 %v2103_v52, %v243_v38  ;;  %v311_v26 = vadd.f32 %v2105_v53, %v269_v14 }
 0x201   : > { %2634 = vst [vmem:[#allocation24_spill] sm:$0xff] %v2277_v34  ;;  %v349_v34 = vstv %s2252_s22  ;;  %v270_v51 = vadd.f32 %v2087_v42, %v227_v46  ;;  %v1232_v17 = vstv %s2272_s19  ;;  %v283_v12 = vadd.f32 %v2089_v43, %v234_v40  ;;  %s2471_s22 = sld [smem:[#allocation5 + $0x48]] }
 0x202   : > { %1149 = vrot.lane.b32.xlu1 %v1144_v59, %s1672_s28  ;;  %1161 = vrot.lane.b32.xlu0 %v1157_v45, %s1672_s28  ;;  %v350_v62 = vmul.f32 %v349_v34, %v1849_v9  ;;  %v340_v28 = vadd.f32 %v2125_v4, %v298_v44  ;;  %v364_v58 = vadd.f32 %v362_v30, %v339_v36  ;;  %v1246_v38 = vstv %s2296_s24  ;;  %s2514_s19 = sld [smem:[#allocation5 + $0x18]]  ;;  %s2522_s24 = sld [smem:[#allocation5 + $0x33]] }
 0x203   : > { %v363_v52 = vmul.f32 %v361_v33, %v1844_v8  ;;  %v312_v53 = vadd.f32 %v2109_v56, %v270_v51  ;;  %v351_v59 = vmul.f32 %v349_v34, %v1844_v8  ;;  %v1206_v39 = vmul.f32 %v1204_v0, %v2304_v37 }
 0x204   : > { %v387_v49 = vpop.permute.xlu1 %386  ;;  %v399_v60 = vpop.permute.xlu0 %398  ;;  %v1219_v46 = vmul.f32 %v1218_v27, %v2285_v3  ;;  %v325_v43 = vadd.f32 %v2111_v57, %v283_v12  ;;  %v352_v45 = vadd.f32 %v350_v62, %v311_v26  ;;  %v356_v30 = vmul.f32 %v355_v15, %v1849_v9 }
 0x205   : > { %v284_v56 = vadd.f32 %v2096_v48, %v235_v7  ;;  %v365_v34 = vadd.f32 %v363_v52, %v340_v28  ;;  %v353_v0 = vadd.f32 %v351_v59, %v312_v53  ;;  %v357_v14 = vmul.f32 %v355_v15, %v1844_v8 }
 0x206   : > { %1163 = vrot.lane.b32.xlu1 %v1158_v1, %s1672_s28  ;;  %1209 = vrot.lane.b32.xlu0 %v1205_v22, %s1671_s25  ;;  %v390_v33 = vadd.f32 %v385_v54, %v352_v45  ;;  %v1220_v36 = vmul.f32 %v1218_v27, %v2304_v37  ;;  %v1233_v9 = vmul.f32 %v1232_v17, %v2285_v3  ;;  %v1260_v28 = vstv %s2325_s15  ;;  %s1491_s15 = smul.u32 48, %s2654_s16 }
 0x207   : > { %v326_v1 = vadd.f32 %v2117_v61, %v284_v56  ;;  %v358_v22 = vadd.f32 %v356_v30, %v325_v43  ;;  %v391_v8 = vadd.f32 %v387_v49, %v353_v0  ;;  %v1234_v62 = vmul.f32 %v1232_v17, %v2304_v37 }
 0x208   : > { %v401_v42 = vpop.permute.xlu1 %400  ;;  %v413_v32 = vpop.permute.xlu0 %412  ;;  %v1247_v51 = vmul.f32 %v1246_v38, %v2285_v3  ;;  %v468_v61 = vstv %s2321_s26  ;;  %v1248_v52 = vmul.f32 %v1246_v38, %v2304_v37  ;;  %v1261_v53 = vmul.f32 %v1260_v28, %v2285_v3  ;;  %s2532_s26 = sld [smem:[#allocation5 + $0x4e]] }
 0x209   : > { %v418_v4 = vadd.f32 %v413_v32, %v364_v58  ;;  %v404_v54 = vadd.f32 %v399_v60, %v358_v22  ;;  %v359_v7 = vadd.f32 %v357_v14, %v326_v1  ;;  %v469_v60 = vmul.f32 %v468_v61, %v1865_v13 }
 0x20a   : > { %1211 = vrot.lane.b32.xlu1 %v1206_v39, %s1671_s25  ;;  %1223 = vrot.lane.b32.xlu0 %v1219_v46, %s1671_s25  ;;  %v474_v59 = vstv %s2334_s27  ;;  %v1274_v46 = vstv %s2337_s29  ;;  %s2566_s29 = scalar_lea.vmem %s2598_s3, %s1491_s15 }
 0x20b   : > { %v405_v49 = vadd.f32 %v401_v42, %v359_v7  ;;  %v470_v42 = vmul.f32 %v468_v61, %v1852_v10  ;;  %v475_v45 = vmul.f32 %v474_v59, %v1865_v13  ;;  %v480_v38 = vstv %s2344_s30 }
 0x20c   : > { %v415_v40 = vpop.permute.xlu1 %414  ;;  %v427_v57 = vpop.permute.xlu0 %426  ;;  %v1276_v22 = vmul.f32 %v1274_v46, %v2304_v37  ;;  %v703_v31 = vstv %s2396_s6 }
 0x20d   : > { %v419_v44 = vadd.f32 %v415_v40, %v365_v34  ;;  %v432_v48 = vadd.f32 %v427_v57, %v390_v33  ;;  %v1262_v33 = vmul.f32 %v1260_v28, %v2304_v37  ;;  %v1275_v34 = vmul.f32 %v1274_v46, %v2285_v3 }
 0x20e   : > { %1225 = vrot.lane.b32.xlu1 %v1220_v36, %s1671_s25  ;;  %1237 = vrot.lane.b32.xlu0 %v1233_v9, %s1671_s25  ;;  %v476_v57 = vmul.f32 %v474_v59, %v1852_v10  ;;  %v481_v36 = vmul.f32 %v480_v38, %v1865_v13 }
 0x20f   : > { %v471_v43 = vadd.f32 %v469_v60, %v432_v48 }
 0x210   : > { %v429_v27 = vpop.permute.xlu1 %428  ;;  %v441_v26 = vpop.permute.xlu0 %440 }
 0x211   : > { %v433_v15 = vadd.f32 %v429_v27, %v391_v8  ;;  %v446_v12 = vadd.f32 %v441_v26, %v404_v54  ;;  %v482_v54 = vmul.f32 %v480_v38, %v1852_v10  ;;  %v1557_v38 = vld [vmem:[%s1815_s21 + $0x10] sm:$0xff] }
 0x212   : > { %1239 = vrot.lane.b32.xlu1 %v1234_v62, %s1671_s25  ;;  %1251 = vrot.lane.b32.xlu0 %v1247_v51, %s1672_s28  ;;  %s1426_s25 = sld [smem:[#allocation5 + $0x9]] }
 0x213   : > { %v477_v40 = vadd.f32 %v475_v45, %v446_v12 }
 0x214   : > { %v443_v58 = vpop.permute.xlu1 %442  ;;  %v455_v17 = vpop.permute.xlu0 %454 }
 0x215   : > { %v447_v32 = vadd.f32 %v443_v58, %v405_v49  ;;  %v460_v39 = vadd.f32 %v455_v17, %v418_v4  ;;  %v472_v4 = vadd.f32 %v470_v42, %v433_v15 }
 0x216   : > { %1253 = vrot.lane.b32.xlu1 %v1248_v52, %s1672_s28  ;;  %1265 = vrot.lane.b32.xlu0 %v1261_v53, %s1672_s28 }
 0x217   : > { %v478_v3 = vadd.f32 %v476_v57, %v447_v32  ;;  %v1558_v57 = vld [vmem:[%s1815_s21 + $0x18] sm:$0xff] }
 0x218   : > { %v457_v30 = vpop.permute.xlu1 %456  ;;  %v504_v56 = vpop.permute.xlu0 %503 }
 0x219   : > { %v461_v0 = vadd.f32 %v457_v30, %v419_v44  ;;  %v509_v14 = vadd.f32 %v504_v56, %v471_v43  ;;  %v483_v44 = vadd.f32 %v481_v36, %v460_v39  ;;  %v585_v56 = vstv %s1426_s25 }
 0x21a   : > { %1267 = vrot.lane.b32.xlu1 %v1262_v33, %s1672_s28  ;;  %1279 = vrot.lane.b32.xlu0 %v1275_v34, %s1672_s28  ;;  %v587_v36 = vmul.f32 %v1558_v57, %v585_v56 }
 0x21b   : > { %v484_v61 = vadd.f32 %v482_v54, %v461_v0  ;;  %v586_v0 = vmul.f32 %v1557_v38, %v585_v56 }
 0x21c   : > { %v506_v9 = vpop.permute.xlu1 %505  ;;  %v518_v1 = vpop.permute.xlu0 %517 }
 0x21d   : > { %v510_v48 = vadd.f32 %v506_v9, %v472_v4  ;;  %v523_v8 = vadd.f32 %v518_v1, %v477_v40 }
 0x21e   : > { %1281 = vrot.lane.b32.xlu1 %v1276_v22, %s1672_s28  ;;  %s1427_s28 = sld [smem:[#allocation5 + $0x24]] }
 0x220   : > { %v520_v27 = vpop.permute.xlu1 %519  ;;  %v532_v26 = vpop.permute.xlu0 %531 }
 0x221   : > { %v524_v62 = vadd.f32 %v520_v27, %v478_v3  ;;  %v537_v51 = vadd.f32 %v532_v26, %v483_v44  ;;  %v597_v27 = vstv %s2394_s5 }
 0x224   : > { %v534_v7 = vpop.permute.xlu1 %533  ;;  %v546_v15 = vpop.permute.xlu0 %545  ;;  %v591_v40 = vstv %s1427_s28 }
 0x225   : > { %v538_v13 = vadd.f32 %v534_v7, %v484_v61  ;;  %v551_v4 = vadd.f32 %v546_v15, %v509_v14  ;;  %v592_v9 = vmul.f32 %v1557_v38, %v591_v40  ;;  %v593_v26 = vmul.f32 %v1558_v57, %v591_v40 }
 0x226   : > { %v598_v7 = vmul.f32 %v1557_v38, %v597_v27 }
 0x227   : > { %v588_v3 = vadd.f32 %v586_v0, %v551_v4 }
 0x228   : > { %v548_v12 = vpop.permute.xlu1 %547  ;;  %v560_v28 = vpop.permute.xlu0 %559 }
 0x229   : > { %v552_v44 = vadd.f32 %v548_v12, %v510_v48  ;;  %v565_v54 = vadd.f32 %v560_v28, %v523_v8  ;;  %v626_v56 = vadd.f32 %v2127_v6, %v588_v3  ;;  %v704_v8 = vmul.f32 %v703_v31, %v1874_v16 }
 0x22a   : > { %v821_v3 = vstv %s2414_s9 }
 0x22b   : > { %v589_v23 = vadd.f32 %v587_v36, %v552_v44  ;;  %v594_v0 = vadd.f32 %v592_v9, %v565_v54 }
 0x22c   : > { %v562_v49 = vpop.permute.xlu1 %561  ;;  %v574_v37 = vpop.permute.xlu0 %573 }
 0x22d   : > { %v566_v61 = vadd.f32 %v562_v49, %v524_v62  ;;  %v579_v48 = vadd.f32 %v574_v37, %v537_v51  ;;  %v599_v62 = vmul.f32 %v1558_v57, %v597_v27  ;;  %v709_v49 = vstv %s2404_s7 }
 0x22e   : > { %v627_v40 = vadd.f32 %v2135_v24, %v589_v23  ;;  %v640_v6 = vadd.f32 %v2137_v25, %v594_v0  ;;  %v668_v51 = vadd.f32 %v2153_v18, %v626_v56  ;;  %v705_v37 = vmul.f32 %v703_v31, %v1883_v19 }
 0x22f   : > { %v595_v12 = vadd.f32 %v593_v26, %v566_v61  ;;  %v600_v36 = vadd.f32 %v598_v7, %v579_v48  ;;  %v710_v9 = vmul.f32 %v709_v49, %v1874_v16  ;;  %v715_v57 = vstv %s2412_s8 }
 0x230   : > { %v576_v60 = vpop.permute.xlu1 %575  ;;  %v2368_v58 = vpop.permute.xlu0 %738  ;;  %v706_v23 = vadd.f32 %v704_v8, %v668_v51  ;;  %v669_v31 = vadd.f32 %v2157_v47, %v627_v40  ;;  %v682_v44 = vadd.f32 %v2159_v50, %v640_v6  ;;  %v711_v54 = vmul.f32 %v709_v49, %v1883_v19 }
 0x231   : > { %v580_v28 = vadd.f32 %v576_v60, %v538_v13  ;;  %v641_v13 = vadd.f32 %v2145_v5, %v595_v12  ;;  %v654_v18 = vadd.f32 %v2147_v35, %v600_v36  ;;  %v716_v27 = vmul.f32 %v715_v57, %v1874_v16 }
 0x232   : > { %v744_v5 = vadd.f32 %v2368_v58, %v706_v23  ;;  %v822_v7 = vmul.f32 %v821_v3, %v1893_v21  ;;  %v827_v56 = vstv %s2423_s10  ;;  %v707_v50 = vadd.f32 %v705_v37, %v669_v31 }
 0x233   : > { %v601_v60 = vadd.f32 %v599_v62, %v580_v28  ;;  %v683_v61 = vadd.f32 %v2165_v55, %v641_v13  ;;  %v712_v58 = vadd.f32 %v710_v9, %v682_v44  ;;  %v696_v0 = vadd.f32 %v2167_v11, %v654_v18 }
 0x234   : > { %v2370_v17 = vpop.permute.xlu1 %740  ;;  %v2372_v52 = vpop.permute.xlu0 %752  ;;  %v823_v8 = vmul.f32 %v821_v3, %v1886_v20  ;;  %v828_v12 = vmul.f32 %v827_v56, %v1893_v21  ;;  %v833_v49 = vstv %s2437_s11  ;;  %v938_v40 = vstv %s2439_s12 }
 0x235   : > { %v655_v26 = vadd.f32 %v2151_v41, %v601_v60  ;;  %v717_v41 = vmul.f32 %v715_v57, %v1883_v19  ;;  %v745_v55 = vadd.f32 %v2370_v17, %v707_v50  ;;  %v758_v48 = vadd.f32 %v2372_v52, %v712_v58 }
 0x236   : > { %v713_v62 = vadd.f32 %v711_v54, %v683_v61  ;;  %v718_v17 = vadd.f32 %v716_v27, %v696_v0  ;;  %v829_v37 = vmul.f32 %v827_v56, %v1886_v20  ;;  %v834_v9 = vmul.f32 %v833_v49, %v1893_v21 }
 0x237   : > { %v697_v28 = vadd.f32 %v2173_v63, %v655_v26  ;;  %v835_v44 = vmul.f32 %v833_v49, %v1886_v20  ;;  %v1056_v58 = vstv %s2484_s23  ;;  %v1062_v49 = vstv %s2502_s4 }
 0x238   : > { %v2374_v10 = vpop.permute.xlu1 %754  ;;  %v2376_v53 = vpop.permute.xlu0 %766 }
 0x239   : > { %v759_v36 = vadd.f32 %v2374_v10, %v713_v62  ;;  %v772_v63 = vadd.f32 %v2376_v53, %v718_v17  ;;  %v719_v13 = vadd.f32 %v717_v41, %v697_v28 }
 0x23c   : > { %v2378_v59 = vpop.permute.xlu1 %768  ;;  %v2380_v32 = vpop.permute.xlu0 %780 }
 0x23d   : > { %v786_v16 = vadd.f32 %v2380_v32, %v744_v5  ;;  %v773_v23 = vadd.f32 %v2378_v59, %v719_v13  ;;  %v1560_v5 = vld [vmem:[%s1815_s21 + $0x28] sm:$0xff] }
 0x23e   : > { %v940_v54 = vmul.f32 %v1560_v5, %v938_v40 }
 0x23f   : > { %v824_v6 = vadd.f32 %v822_v7, %v786_v16 }
 0x240   : > { %v2382_v39 = vpop.permute.xlu1 %782  ;;  %v2384_v46 = vpop.permute.xlu0 %794 }
 0x241   : > { %v787_v52 = vadd.f32 %v2382_v39, %v745_v55  ;;  %v800_v32 = vadd.f32 %v2384_v46, %v758_v48  ;;  %v1559_v39 = vld [vmem:[%s1815_s21 + $0x20] sm:$0xff]  ;;  %v944_v46 = vstv %s2455_s18  ;;  %s2512_s21 = sld [smem:[#allocation5 + $0x4b]] }
 0x242   : > { %v939_v57 = vmul.f32 %v1559_v39, %v938_v40  ;;  %v945_v61 = vmul.f32 %v1559_v39, %v944_v46  ;;  %v946_v0 = vmul.f32 %v1560_v5, %v944_v46 }
 0x243   : > { %v830_v18 = vadd.f32 %v828_v12, %v800_v32  ;;  %v1057_v12 = vmul.f32 %v1056_v58, %v1917_v29  ;;  %v2636_v32 = vld [vmem:[#allocation15_spill] sm:$0xff] }
 0x244   : > { %v2386_v43 = vpop.permute.xlu1 %796  ;;  %v2388_v42 = vpop.permute.xlu0 %808 }
 0x245   : > { %v801_v60 = vadd.f32 %v2386_v43, %v759_v36  ;;  %v814_v53 = vadd.f32 %v2388_v42, %v772_v63  ;;  %v950_v42 = vstv %s2471_s22  ;;  %v2638_v63 = vld [vmem:[#allocation11_spill] sm:$0xff] }
 0x246   : > { %v951_v41 = vmul.f32 %v1559_v39, %v950_v42 }
 0x247   : > { %v831_v26 = vadd.f32 %v829_v37, %v801_v60  ;;  %v836_v59 = vadd.f32 %v834_v9, %v814_v53  ;;  %v1063_v37 = vmul.f32 %v1062_v49, %v1917_v29  ;;  %v2639_v9 = vld [vmem:[#allocation16_spill] sm:$0xff]  ;;  %v1068_v60 = vstv %s2512_s21  ;;  %v2640_v53 = vld [vmem:[#allocation17_spill] sm:$0xff] }
 0x248   : > { %v2390_v45 = vpop.permute.xlu1 %810  ;;  %v2392_v30 = vpop.permute.xlu0 %856 }
 0x249   : > { %v862_v51 = vadd.f32 %v2392_v30, %v824_v6  ;;  %v825_v30 = vadd.f32 %v823_v8, %v787_v52  ;;  %v815_v27 = vadd.f32 %v2390_v45, %v773_v23 }
 0x24b   : > { %v837_v45 = vadd.f32 %v835_v44, %v815_v27  ;;  %v2643_v27 = vld [vmem:[#allocation18_spill] sm:$0xff] }
 0x24c   : > { %v2398_v33 = vpop.permute.xlu1 %858  ;;  %v2400_v34 = vpop.permute.xlu0 %870 }
 0x24d   : > { %v863_v31 = vadd.f32 %v2398_v33, %v825_v30  ;;  %v876_v43 = vadd.f32 %v2400_v34, %v830_v18 }
 0x250   : > { %v2406_v1 = vpop.permute.xlu1 %872  ;;  %v2408_v22 = vpop.permute.xlu0 %884 }
 0x251   : > { %v877_v20 = vadd.f32 %v2406_v1, %v831_v26  ;;  %v890_v50 = vadd.f32 %v2408_v22, %v836_v59  ;;  %v2645_v59 = vld [vmem:[#allocation12_spill] sm:$0xff] }
 0x254   : > { %v2416_v14 = vpop.permute.xlu1 %886  ;;  %v2418_v15 = vpop.permute.xlu0 %898 }
 0x255   : > { %v904_v21 = vadd.f32 %v2418_v15, %v862_v51  ;;  %v891_v22 = vadd.f32 %v2416_v14, %v837_v45  ;;  %v2637_v14 = vld [vmem:[#allocation19_spill] sm:$0xff]  ;;  %v1058_v51 = vmul.f32 %v1056_v58, %v2638_v63 }
 0x256   : > { %v2646_v58 = vld [vmem:[#allocation23_spill] sm:$0xff] }
 0x257   : > { %v941_v56 = vadd.f32 %v939_v57, %v904_v21  ;;  %v1174_v57 = vstv %s2514_s19  ;;  %v2641_v21 = vld [vmem:[#allocation20_spill] sm:$0xff] }
 0x258   : > { %v2425_v38 = vpop.permute.xlu1 %900  ;;  %v2427_v4 = vpop.permute.xlu0 %912 }
 0x259   : > { %v905_v33 = vadd.f32 %v2425_v38, %v863_v31  ;;  %v918_v34 = vadd.f32 %v2427_v4, %v876_v43  ;;  %v979_v38 = vadd.f32 %v2175_v2, %v941_v56  ;;  %v2635_v2 = vld [vmem:[#allocation14_spill] sm:$0xff]  ;;  %v2642_v31 = vld [vmem:[#allocation21_spill] sm:$0xff]  ;;  %v1175_v56 = vmul.f32 %v1174_v57, %v2645_v59 }
 0x25b   : > { %v942_v4 = vadd.f32 %v940_v54, %v905_v33  ;;  %v947_v8 = vadd.f32 %v945_v61, %v918_v34  ;;  %v1021_v36 = vadd.f32 %v2637_v14, %v979_v38  ;;  %v1069_v54 = vmul.f32 %v1068_v60, %v1917_v29  ;;  %v2644_v61 = vld [vmem:[#allocation22_spill] sm:$0xff]  ;;  %v2647_v38 = vld [vmem:[#allocation13_spill] sm:$0xff] }
 0x25c   : > { %v2441_v24 = vpop.permute.xlu1 %914  ;;  %v2443_v25 = vpop.permute.xlu0 %926  ;;  %v1180_v34 = vstv %s2522_s24 }
 0x25d   : > { %v919_v16 = vadd.f32 %v2441_v24, %v877_v20  ;;  %v932_v1 = vadd.f32 %v2443_v25, %v890_v50  ;;  %v952_v24 = vmul.f32 %v1560_v5, %v950_v42  ;;  %v980_v52 = vadd.f32 %v2635_v2, %v942_v4 }
 0x25e   : > { %v993_v25 = vadd.f32 %v2636_v32, %v947_v8  ;;  %v1059_v18 = vadd.f32 %v1057_v12, %v1021_v36  ;;  %v1064_v5 = vmul.f32 %v1062_v49, %v2638_v63  ;;  %v1176_v4 = vmul.f32 %v1174_v57, %v2647_v38 }
 0x25f   : > { %v948_v62 = vadd.f32 %v946_v0, %v919_v16  ;;  %v953_v6 = vadd.f32 %v951_v41, %v932_v1  ;;  %v1022_v23 = vadd.f32 %v2641_v21, %v980_v52  ;;  %v1070_v41 = vmul.f32 %v1068_v60, %v2638_v63  ;;  %v2648_v1 = vld [vmem:[#allocation24_spill] sm:$0xff] }
 0x260   : > { %v2457_v35 = vpop.permute.xlu1 %928  ;;  %v2459_v47 = vpop.permute.xlu0 %1091  ;;  %v1035_v43 = vadd.f32 %v2642_v31, %v993_v25  ;;  %v1181_v12 = vmul.f32 %v1180_v34, %v2645_v59  ;;  %v1182_v25 = vmul.f32 %v1180_v34, %v2647_v38 }
 0x261   : > { %v933_v28 = vadd.f32 %v2457_v35, %v891_v22  ;;  %v994_v13 = vadd.f32 %v2639_v9, %v948_v62  ;;  %v1007_v30 = vadd.f32 %v2640_v53, %v953_v6  ;;  %v1097_v44 = vadd.f32 %v2459_v47, %v1059_v18 }
 0x262   : > { %v1060_v50 = vadd.f32 %v1058_v51, %v1022_v23  ;;  %v1065_v47 = vadd.f32 %v1063_v37, %v1035_v43 }
 0x263   : > { %v954_v35 = vadd.f32 %v952_v24, %v933_v28  ;;  %v1036_v42 = vadd.f32 %v2644_v61, %v994_v13  ;;  %v1049_v45 = vadd.f32 %v2646_v58, %v1007_v30  ;;  %v1186_v24 = vstv %s2532_s26 }
 0x264   : > { %v2473_v11 = vpop.permute.xlu1 %1093  ;;  %v2475_v19 = vpop.permute.xlu0 %1105  ;;  %v1187_v36 = vmul.f32 %v1186_v24, %v2645_v59 }
 0x265   : > { %v1008_v26 = vadd.f32 %v2643_v27, %v954_v35  ;;  %v1098_v29 = vadd.f32 %v2473_v11, %v1060_v50  ;;  %v1111_v16 = vadd.f32 %v2475_v19, %v1065_v47  ;;  %v1066_v8 = vadd.f32 %v1064_v5, %v1036_v42 }
 0x266   : > { %v1071_v49 = vadd.f32 %v1069_v54, %v1049_v45  ;;  %v1188_v35 = vmul.f32 %v1186_v24, %v2647_v38 }
 0x267   : > { %v1050_v22 = vadd.f32 %v2648_v1, %v1008_v26 }
 0x268   : > { %v2489_v3 = vpop.permute.xlu1 %1107  ;;  %v2491_v10 = vpop.permute.xlu0 %1119 }
 0x269   : > { %v1112_v11 = vadd.f32 %v2489_v3, %v1066_v8  ;;  %v1125_v19 = vadd.f32 %v2491_v10, %v1071_v49  ;;  %v1072_v6 = vadd.f32 %v1070_v41, %v1050_v22 }
 0x26c   : > { %v2504_v7 = vpop.permute.xlu1 %1121  ;;  %v1134_v15 = vpop.permute.xlu0 %1133 }
 0x26d   : > { %v1139_v0 = vadd.f32 %v1134_v15, %v1097_v44  ;;  %v1126_v37 = vadd.f32 %v2504_v7, %v1072_v6 }
 0x26f   : > { %v1177_v52 = vadd.f32 %v1175_v56, %v1139_v0 }
 0x270   : > { %v1136_v55 = vpop.permute.xlu1 %1135  ;;  %v1148_v48 = vpop.permute.xlu0 %1147 }
 0x271   : > { %v1140_v2 = vadd.f32 %v1136_v55, %v1098_v29  ;;  %v1153_v15 = vadd.f32 %v1148_v48, %v1111_v16 }
 0x273   : > { %v1178_v3 = vadd.f32 %v1176_v4, %v1140_v2  ;;  %v1183_v48 = vadd.f32 %v1181_v12, %v1153_v15 }
 0x274   : > { %v1150_v40 = vpop.permute.xlu1 %1149  ;;  %v1162_v17 = vpop.permute.xlu0 %1161 }
 0x275   : > { %v1154_v14 = vadd.f32 %v1150_v40, %v1112_v11  ;;  %v1167_v55 = vadd.f32 %v1162_v17, %v1125_v19 }
 0x277   : > { %v1184_v13 = vadd.f32 %v1182_v25, %v1154_v14 }
 0x278   : > { %v1164_v39 = vpop.permute.xlu1 %1163  ;;  %v1210_v46 = vpop.permute.xlu0 %1209 }
 0x279   : > { %v1215_v32 = vadd.f32 %v1210_v46, %v1177_v52  ;;  %v1168_v17 = vadd.f32 %v1164_v39, %v1126_v37  ;;  %v1189_v46 = vadd.f32 %v1187_v36, %v1167_v55 }
 0x27b   : > { %v1190_v31 = vadd.f32 %v1188_v35, %v1168_v17 }
 0x27c   : > { %v1212_v33 = vpop.permute.xlu1 %1211  ;;  %v1224_v20 = vpop.permute.xlu0 %1223 }
 0x27d   : > { %v1216_v40 = vadd.f32 %v1212_v33, %v1178_v3  ;;  %v1229_v9 = vadd.f32 %v1224_v20, %v1183_v48 }
 0x280   : > { %v1226_v62 = vpop.permute.xlu1 %1225  ;;  %v1238_v28 = vpop.permute.xlu0 %1237 }
 0x281   : > { %v1230_v18 = vadd.f32 %v1226_v62, %v1184_v13  ;;  %v1243_v7 = vadd.f32 %v1238_v28, %v1189_v46 }
 0x284   : > { %v1240_v63 = vpop.permute.xlu1 %1239  ;;  %v1252_v51 = vpop.permute.xlu0 %1251 }
 0x285   : > { %v1257_v10 = vadd.f32 %v1252_v51, %v1215_v32  ;;  %v1244_v5 = vadd.f32 %v1240_v63, %v1190_v31 }
 0x287   : > { %1288 = vst.msk [vmem:[%s2566_s29] sm:$0xff] %vm1287_vm3, %v1257_v10 }
 0x288   : > { %v1254_v60 = vpop.permute.xlu1 %1253  ;;  %v1266_v57 = vpop.permute.xlu0 %1265 }
 0x289   : > { %v1258_v53 = vadd.f32 %v1254_v60, %v1216_v40  ;;  %v1271_v30 = vadd.f32 %v1266_v57, %v1229_v9 }
 0x28b   : > { %1290 = vst.msk [vmem:[%s2566_s29 + $0x8] sm:$0x3f] %vm1289_vm4, %v1258_v53 }
 0x28c   : > { %1482 = vst.msk [vmem:[%s2566_s29 + $0x10] sm:$0xff] %vm1287_vm3, %v1271_v30  ;;  %v1268_v21 = vpop.permute.xlu1 %1267  ;;  %v1280_v23 = vpop.permute.xlu0 %1279 }
 0x28d   : > { %v1272_v43 = vadd.f32 %v1268_v21, %v1230_v18  ;;  %v1285_v44 = vadd.f32 %v1280_v23, %v1243_v7 }
 0x28f   : > { %1483 = vst.msk [vmem:[%s2566_s29 + $0x18] sm:$0x3f] %vm1289_vm4, %v1272_v43 }
 0x290   : > { %1484 = vst.msk [vmem:[%s2566_s29 + $0x20] sm:$0xff] %vm1287_vm3, %v1285_v44  ;;  %v1282_v39 = vpop.permute.xlu1 %1281 }
 0x291   : > { %v1286_v54 = vadd.f32 %v1282_v39, %v1244_v5 }
 0x293   : > { %1485 = vst.msk [vmem:[%s2566_s29 + $0x28] sm:$0x3f] %vm1289_vm4, %v1286_v54 }
 0x294 PF: > { %p15_p11 = scmp.ge.s32.totalorder %s1715_s17, 4   ;;  %s2649_s12 = smov %s1655_s13 }
 0x295   : > { %s2650_s13 = smov %s1659_s14  ;;  %s2651_s14 = smov %s1725_s20 }
 0x296   : > { %s2652_s15 = smov %s1715_s17  ;;  %17 = sbr.rel (!%p15_p11) target bundleno = 5 (0x5), region = 85 }
 0x29d   :  { %1318 = vsyncpa [#allocation3], 1 }
 0x29e   :  { %1320 = vsyncpa [#allocation3 + $0x1], 1 }
 0x29f   :  { %1321 = vsyncpa [#allocation4], 1 }
 0x2a0   :  { %1323 = vsyncpa [#allocation4 + $0x1], 1 }
 0x2a1   :  { %1324 = vsyncpa [#allocation7], 1 }

</bundles_post_ra>
